<compile_context>
chip_gen: v6e
topology: v6e:2x2x1
jax: 0.10.0
libtpu: 0.0.40
codegen_flags: <defaults>
</compile_context>

<pallas_src>
import functools
import numpy as np
import jax
import jax.numpy as jnp
from jax.experimental import pallas as pl
from jax.experimental.pallas import tpu as pltpu


# Geometry implied by fc1.in_features == 1032:
#   (B,1,12,12) -> conv(k4,s2) -> (B,16,5,5) -> conv(k2,s1) -> (B,32,4,4)
#   flatten: 512 + 512 + 8 = 1032
_IMG = 12
_OH1 = 5                 # conv1 output spatial size
_OH2 = 4                 # conv2 output spatial size
_NPOS1 = _OH1 * _OH1     # 25 conv1 output positions
_NPOS2 = _OH2 * _OH2     # 16 conv2 output positions
_C1 = 16                 # conv1 out channels
_C2 = 32                 # conv2 out channels
_H1 = _NPOS1 * _C1       # 400 conv1 features  (pos-major, channel-inner)
_H2 = _NPOS2 * _C2       # 512 conv2 features  (pos-major, channel-inner)


# ----------------------------------------------------------------------------
# Prepare-time folding of the convolutions into dense linear maps
# ----------------------------------------------------------------------------
def _conv1_to_matrix(w):
    """OIHW (16,1,4,4) conv1 weight -> (144, 400) map on the flat 12x12 image.

    Output column order: (oi*5 + oj) * 16 + c_out  (pos-major, channel-inner).
    """
    w = np.asarray(w, np.float32)
    M = np.zeros((_IMG * _IMG, _H1), np.float32)
    for oi in range(_OH1):
        for oj in range(_OH1):
            pos = oi * _OH1 + oj
            for kh in range(4):
                for kw in range(4):
                    pix = (2 * oi + kh) * _IMG + (2 * oj + kw)
                    M[pix, pos * _C1:(pos + 1) * _C1] = w[:, 0, kh, kw]
    return M


def _conv2_to_matrix(w):
    """OIHW (32,16,2,2) conv2 weight -> (400, 512) map on conv1 activations.

    Row order matches conv1 output columns; output column order:
    (oi*4 + oj) * 32 + c_out (pos-major, channel-inner).
    """
    w = np.asarray(w, np.float32)
    M = np.zeros((_H1, _H2), np.float32)
    for oi in range(_OH2):
        for oj in range(_OH2):
            pos2 = oi * _OH2 + oj
            for kh in range(2):
                for kw in range(2):
                    pos1 = (oi + kh) * _OH1 + (oj + kw)
                    for c1 in range(_C1):
                        M[pos1 * _C1 + c1, pos2 * _C2:(pos2 + 1) * _C2] = w[:, c1, kh, kw]
    return M


def _bias_layout(n_act):
    """All 7 biases packed into one (1, width) f32 slab, 128-lane aligned."""
    segs = [("c1_0", _H1), ("c1_1", _H1), ("c2_0", _H2), ("c2_1", _H2),
            ("fc1", 256), ("fc2", 128), ("fc3", n_act)]
    layout, off = {}, 0
    for name, n in segs:
        layout[name] = (off, n)
        off += -(-n // 128) * 128           # pad each segment to a lane tile
    return layout, off


# ----------------------------------------------------------------------------
# Fused Pallas kernel: conv1 -> conv2 -> fc1 -> fc2 -> fc3 (both branches)
# ----------------------------------------------------------------------------
def _dqn_fused_kernel(xs_ref, x3_ref, m1_ref, m2_ref, wf1b_ref, wf1x3_ref,
                      wf2_ref, wf3_ref, bias_ref, o_ref, *, blay):
    f32, bf16 = jnp.float32, jnp.bfloat16

    def bias(name):
        off, n = blay[name]
        return bias_ref[:, off:off + n]          # static, lane-aligned slice

    # fc1 contribution from the 8 raw x3 features.
    acc = jnp.dot(x3_ref[...], wf1x3_ref[...], preferred_element_type=f32)  # (B,256)

    # Two conv branches, each = 3 dense dots (conv1, conv2, fc1-partial).
    for g in range(2):
        h1 = jnp.dot(xs_ref[g], m1_ref[g], preferred_element_type=f32)      # (B,400)
        h1 = jnp.maximum(h1 + bias(f"c1_{g}"), 0.0).astype(bf16)
        h2 = jnp.dot(h1, m2_ref[g], preferred_element_type=f32)             # (B,512)
        h2 = jnp.maximum(h2 + bias(f"c2_{g}"), 0.0).astype(bf16)
        acc = acc + jnp.dot(h2, wf1b_ref[g], preferred_element_type=f32)    # (B,256)

    h = jnp.maximum(acc + bias("fc1"), 0.0).astype(bf16)                    # (B,256)
    h = jnp.dot(h, wf2_ref[...], preferred_element_type=f32)
    h = jnp.maximum(h + bias("fc2"), 0.0).astype(bf16)                      # (B,128)
    y = jnp.dot(h, wf3_ref[...], preferred_element_type=f32) + bias("fc3")
    o_ref[...] = y.astype(o_ref.dtype)


def dqn_forward(kparams, x1, x2, x3):
    """Fused forward. kparams is the output of prepare_params()."""
    B = x1.shape[0]
    n_act = kparams["wf3"].shape[1]
    blay, _ = _bias_layout(n_act)

    # Tiny XLA-side glue only: flatten + stack the two image inputs, cast bf16.
    xs = jnp.stack([x1.reshape(B, -1), x2.reshape(B, -1)]).astype(jnp.bfloat16)
    x3f = x3.reshape(B, -1).astype(jnp.bfloat16)

    args = (xs, x3f, kparams["m1"], kparams["m2"], kparams["wf1b"],
            kparams["wf1x3"], kparams["wf2"], kparams["wf3"], kparams["bias"])

    in_specs = [pl.BlockSpec(a.shape, lambda i, _n=a.ndim: (0,) * _n) for a in args]

    flops = int(2 * B * (2 * (_IMG * _IMG * _H1 + _H1 * _H2 + _H2 * 256)
                         + 8 * 256 + 256 * 128 + 128 * n_act))
    bytes_accessed = int(sum(int(a.size) * a.dtype.itemsize for a in args)
                         + B * n_act * 4)

    kernel = functools.partial(_dqn_fused_kernel, blay=blay)
    return pl.pallas_call(
        kernel,
        out_shape=jax.ShapeDtypeStruct((B, n_act), jnp.float32),
        grid=(1,),
        in_specs=in_specs,
        out_specs=pl.BlockSpec((B, n_act), lambda i: (0, 0)),
        compiler_params=pltpu.CompilerParams(
            dimension_semantics=("arbitrary",)),
        cost_estimate=pl.CostEstimate(flops=flops, transcendentals=0,
                                      bytes_accessed=bytes_accessed),
    )(*args)


# ----------------------------------------------------------------------------
# Parameters (deterministic, PyTorch-default-style uniform init, torch layouts)
# ----------------------------------------------------------------------------
def _uniform(key, shape, fan_in):
    bound = 1.0 / np.sqrt(fan_in)
    return jax.random.uniform(key, shape, jnp.float32, -bound, bound)


def init_params(key, action_size=24):
    ks = jax.random.split(key, 14)
    p = {}
    # conv weights in OIHW (PyTorch layout)
    p["w_c1b1"] = _uniform(ks[0], (16, 1, 4, 4), 1 * 4 * 4)
    p["b_c1b1"] = _uniform(ks[1], (16,), 1 * 4 * 4)
    p["w_c2b1"] = _uniform(ks[2], (32, 16, 2, 2), 16 * 2 * 2)
    p["b_c2b1"] = _uniform(ks[3], (32,), 16 * 2 * 2)
    p["w_c1b2"] = _uniform(ks[4], (16, 1, 4, 4), 1 * 4 * 4)
    p["b_c1b2"] = _uniform(ks[5], (16,), 1 * 4 * 4)
    p["w_c2b2"] = _uniform(ks[6], (32, 16, 2, 2), 16 * 2 * 2)
    p["b_c2b2"] = _uniform(ks[7], (32,), 16 * 2 * 2)
    # fc weights stored as (in, out) — transposed relative to torch.nn.Linear
    p["w_fc1"] = _uniform(ks[8], (1032, 256), 1032)
    p["b_fc1"] = _uniform(ks[9], (256,), 1032)
    p["w_fc2"] = _uniform(ks[10], (256, 128), 256)
    p["b_fc2"] = _uniform(ks[11], (128,), 256)
    p["w_fc3"] = _uniform(ks[12], (128, action_size), 128)
    p["b_fc3"] = _uniform(ks[13], (128,) and (128, action_size)[1:] if False else (action_size,), 128)
    return p


def prepare_params(params):
    """One-time rearrangement of torch-layout params into kernel-ready layout."""
    n_act = params["w_fc3"].shape[1]
    blay, width = _bias_layout(n_act)
    bf16 = jnp.bfloat16

    def fc1_branch(wslab):       # torch flatten rows (c*16+p) -> rows (p*32+c)
        return np.asarray(wslab, np.float32).reshape(_C2, _NPOS2, 256) \
                 .transpose(1, 0, 2).reshape(_H2, 256)

    wfc1 = np.asarray(params["w_fc1"], np.float32)

    slab = np.zeros((1, width), np.float32)

    def put(name, vec):
        off, n = blay[name]
        slab[0, off:off + n] = np.asarray(vec, np.float32).reshape(-1)

    put("c1_0", np.tile(np.asarray(params["b_c1b1"]), _NPOS1))
    put("c1_1", np.tile(np.asarray(params["b_c1b2"]), _NPOS1))
    put("c2_0", np.tile(np.asarray(params["b_c2b1"]), _NPOS2))
    put("c2_1", np.tile(np.asarray(params["b_c2b2"]), _NPOS2))
    put("fc1", params["b_fc1"])
    put("fc2", params["b_fc2"])
    put("fc3", params["b_fc3"])

    return {
        "m1": jnp.asarray(np.stack([_conv1_to_matrix(params["w_c1b1"]),
                                    _conv1_to_matrix(params["w_c1b2"])]), bf16),
        "m2": jnp.asarray(np.stack([_conv2_to_matrix(params["w_c2b1"]),
                                    _conv2_to_matrix(params["w_c2b2"])]), bf16),
        "wf1b": jnp.asarray(np.stack([fc1_branch(wfc1[:_H2]),
                                      fc1_branch(wfc1[_H2:2 * _H2])]), bf16),
        "wf1x3": jnp.asarray(wfc1[2 * _H2:], bf16),
        "wf2": jnp.asarray(params["w_fc2"], bf16),
        "wf3": jnp.asarray(params["w_fc3"], bf16),
        "bias": jnp.asarray(slab, jnp.float32),
    }


# ----------------------------------------------------------------------------
# Pure-JAX reference (correctness check only; uses torch-layout params)
# ----------------------------------------------------------------------------
def reference_forward(params, x1, x2, x3):
    def conv_relu(x, w, b, stride):
        y = jax.lax.conv_general_dilated(
            x, w, (stride, stride), "VALID",
            dimension_numbers=("NCHW", "OIHW", "NCHW"),
            precision=jax.lax.Precision.HIGHEST)
        return jax.nn.relu(y + b[None, :, None, None])

    h1 = conv_relu(x1, params["w_c1b1"], params["b_c1b1"], 2)
    h1 = conv_relu(h1, params["w_c2b1"], params["b_c2b1"], 1)
    f1 = h1.reshape(h1.shape[0], -1)
    h2 = conv_relu(x2, params["w_c1b2"], params["b_c1b2"], 2)
    h2 = conv_relu(h2, params["w_c2b2"], params["b_c2b2"], 1)
    f2 = h2.reshape(h2.shape[0], -1)
    f3 = x3.reshape(x3.shape[0], -1)
    x = jnp.concatenate([f1, f2, f3], axis=1)
    x = jax.nn.relu(x @ params["w_fc1"] + params["b_fc1"])
    x = jax.nn.relu(x @ params["w_fc2"] + params["b_fc2"])
    return x @ params["w_fc3"] + params["b_fc3"]


if __name__ == "__main__":
    key = jax.random.PRNGKey(0)
    kp_key, k1, k2, k3 = jax.random.split(key, 4)

    params = init_params(kp_key, action_size=24)
    kparams = prepare_params(params)        # one-time weight folding / re-layout

    # Shapes implied by fc1 in_features=1032:
    #   each conv branch: (B,1,12,12) -> (B,16,5,5) -> (B,32,4,4) -> 512 feats
    #   x3 supplies the remaining 8 features: 512 + 512 + 8 = 1032.
    B = 2
    x1 = jax.random.normal(k1, (B, 1, 12, 12), jnp.float32)
    x2 = jax.random.normal(k2, (B, 1, 12, 12), jnp.float32)
    x3 = jax.random.normal(k3, (B, 8), jnp.float32)

    fwd = jax.jit(dqn_forward)
    out = jax.block_until_ready(fwd(kparams, x1, x2, x3))
    assert out.shape == (B, 24), out.shape

    ref = jax.block_until_ready(jax.jit(reference_forward)(params, x1, x2, x3))
    # Kernel runs bf16 operands with f32 accumulation; tolerance covers that.
    np.testing.assert_allclose(np.asarray(out), np.asarray(ref),
                               rtol=5e-2, atol=5e-2)

    print("KERNEL_OK")
</pallas_src>

<mosaic_0001>
module attributes {stable_mosaic.version = 11 : i64} {
  func.func @_dqn_fused_kernel(%arg0: i32, %arg1: memref<2x2x144xbf16, #tpu.memory_space<vmem>>, %arg2: memref<2x8xbf16, #tpu.memory_space<vmem>>, %arg3: memref<2x144x400xbf16, #tpu.memory_space<vmem>>, %arg4: memref<2x400x512xbf16, #tpu.memory_space<vmem>>, %arg5: memref<2x512x256xbf16, #tpu.memory_space<vmem>>, %arg6: memref<8x256xbf16, #tpu.memory_space<vmem>>, %arg7: memref<256x128xbf16, #tpu.memory_space<vmem>>, %arg8: memref<128x24xbf16, #tpu.memory_space<vmem>>, %arg9: memref<1x2560xf32, #tpu.memory_space<vmem>>, %arg10: memref<2x24xf32, #tpu.memory_space<vmem>>) attributes {dimension_semantics = [#tpu.dimension_semantics<arbitrary>], iteration_bounds = array<i64: 1>, scalar_prefetch = 0 : i64, scratch_operands = 0 : i64, tpu.core_type = #tpu.core_type<tc>, window_params = [{pipeline_mode = #tpu.pipeline_mode<synchronous>, transform_indices = @transform_0, window_bounds = array<i64: 2, 2, 144>}, {pipeline_mode = #tpu.pipeline_mode<synchronous>, transform_indices = @transform_1, window_bounds = array<i64: 2, 8>}, {pipeline_mode = #tpu.pipeline_mode<synchronous>, transform_indices = @transform_2, window_bounds = array<i64: 2, 144, 400>}, {pipeline_mode = #tpu.pipeline_mode<synchronous>, transform_indices = @transform_3, window_bounds = array<i64: 2, 400, 512>}, {pipeline_mode = #tpu.pipeline_mode<synchronous>, transform_indices = @transform_4, window_bounds = array<i64: 2, 512, 256>}, {pipeline_mode = #tpu.pipeline_mode<synchronous>, transform_indices = @transform_5, window_bounds = array<i64: 8, 256>}, {pipeline_mode = #tpu.pipeline_mode<synchronous>, transform_indices = @transform_6, window_bounds = array<i64: 256, 128>}, {pipeline_mode = #tpu.pipeline_mode<synchronous>, transform_indices = @transform_7, window_bounds = array<i64: 128, 24>}, {pipeline_mode = #tpu.pipeline_mode<synchronous>, transform_indices = @transform_8, window_bounds = array<i64: 1, 2560>}, {pipeline_mode = #tpu.pipeline_mode<synchronous>, transform_indices = @transform_9, window_bounds = array<i64: 2, 24>}]} {
    %c0 = arith.constant 0 : index
    %c0_0 = arith.constant 0 : index
    %0 = vector.load %arg2[%c0, %c0_0] : memref<2x8xbf16, #tpu.memory_space<vmem>>, vector<2x8xbf16>
    %c0_1 = arith.constant 0 : index
    %c0_2 = arith.constant 0 : index
    %1 = vector.load %arg6[%c0_1, %c0_2] : memref<8x256xbf16, #tpu.memory_space<vmem>>, vector<8x256xbf16>
    %cst = arith.constant dense<0.000000e+00> : vector<2x256xf32>
    %2 = tpu.matmul %0, %1, %cst {dimension_numbers = #tpu.dot_dimension_numbers<[1], [0], [0], [1], [0, 0, 1, 1], [], []>} : vector<2x8xbf16>, vector<8x256xbf16>, vector<2x256xf32> -> vector<2x256xf32>
    %c0_3 = arith.constant 0 : index
    %c0_4 = arith.constant 0 : index
    %c0_5 = arith.constant 0 : index
    %3 = vector.load %arg1[%c0_3, %c0_4, %c0_5] : memref<2x2x144xbf16, #tpu.memory_space<vmem>>, vector<1x2x144xbf16>
    %4 = vector.shape_cast %3 : vector<1x2x144xbf16> to vector<2x144xbf16>
    %c0_6 = arith.constant 0 : index
    %c0_7 = arith.constant 0 : index
    %c0_8 = arith.constant 0 : index
    %5 = vector.load %arg3[%c0_6, %c0_7, %c0_8] : memref<2x144x400xbf16, #tpu.memory_space<vmem>>, vector<1x144x400xbf16>
    %6 = vector.shape_cast %5 : vector<1x144x400xbf16> to vector<144x400xbf16>
    %cst_9 = arith.constant dense<0.000000e+00> : vector<2x400xf32>
    %7 = tpu.matmul %4, %6, %cst_9 {dimension_numbers = #tpu.dot_dimension_numbers<[1], [0], [0], [1], [0, 0, 1, 1], [], []>} : vector<2x144xbf16>, vector<144x400xbf16>, vector<2x400xf32> -> vector<2x400xf32>
    %c0_10 = arith.constant 0 : index
    %c0_11 = arith.constant 0 : index
    %8 = vector.load %arg9[%c0_10, %c0_11] : memref<1x2560xf32, #tpu.memory_space<vmem>>, vector<1x400xf32>
    %9 = vector.broadcast %8 : vector<1x400xf32> to vector<2x400xf32>
    %10 = arith.addf %7, %9 : vector<2x400xf32>
    %cst_12 = arith.constant 0.000000e+00 : f32
    %11 = vector.broadcast %cst_12 : f32 to vector<2x400xf32>
    %12 = arith.maximumf %10, %11 : vector<2x400xf32>
    %13 = arith.truncf %12 : vector<2x400xf32> to vector<2x400xbf16>
    %c0_13 = arith.constant 0 : index
    %c0_14 = arith.constant 0 : index
    %c0_15 = arith.constant 0 : index
    %14 = vector.load %arg4[%c0_13, %c0_14, %c0_15] : memref<2x400x512xbf16, #tpu.memory_space<vmem>>, vector<1x400x512xbf16>
    %15 = vector.shape_cast %14 : vector<1x400x512xbf16> to vector<400x512xbf16>
    %cst_16 = arith.constant dense<0.000000e+00> : vector<2x512xf32>
    %16 = tpu.matmul %13, %15, %cst_16 {dimension_numbers = #tpu.dot_dimension_numbers<[1], [0], [0], [1], [0, 0, 1, 1], [], []>} : vector<2x400xbf16>, vector<400x512xbf16>, vector<2x512xf32> -> vector<2x512xf32>
    %c0_17 = arith.constant 0 : index
    %c1024 = arith.constant 1024 : index
    %17 = vector.load %arg9[%c0_17, %c1024] : memref<1x2560xf32, #tpu.memory_space<vmem>>, vector<1x512xf32>
    %18 = vector.broadcast %17 : vector<1x512xf32> to vector<2x512xf32>
    %19 = arith.addf %16, %18 : vector<2x512xf32>
    %cst_18 = arith.constant 0.000000e+00 : f32
    %20 = vector.broadcast %cst_18 : f32 to vector<2x512xf32>
    %21 = arith.maximumf %19, %20 : vector<2x512xf32>
    %22 = arith.truncf %21 : vector<2x512xf32> to vector<2x512xbf16>
    %c0_19 = arith.constant 0 : index
    %c0_20 = arith.constant 0 : index
    %c0_21 = arith.constant 0 : index
    %23 = vector.load %arg5[%c0_19, %c0_20, %c0_21] : memref<2x512x256xbf16, #tpu.memory_space<vmem>>, vector<1x512x256xbf16>
    %24 = vector.shape_cast %23 : vector<1x512x256xbf16> to vector<512x256xbf16>
    %cst_22 = arith.constant dense<0.000000e+00> : vector<2x256xf32>
    %25 = tpu.matmul %22, %24, %cst_22 {dimension_numbers = #tpu.dot_dimension_numbers<[1], [0], [0], [1], [0, 0, 1, 1], [], []>} : vector<2x512xbf16>, vector<512x256xbf16>, vector<2x256xf32> -> vector<2x256xf32>
    %26 = arith.addf %2, %25 : vector<2x256xf32>
    %c1 = arith.constant 1 : index
    %c0_23 = arith.constant 0 : index
    %c0_24 = arith.constant 0 : index
    %27 = vector.load %arg1[%c1, %c0_23, %c0_24] : memref<2x2x144xbf16, #tpu.memory_space<vmem>>, vector<1x2x144xbf16>
    %28 = vector.shape_cast %27 : vector<1x2x144xbf16> to vector<2x144xbf16>
    %c1_25 = arith.constant 1 : index
    %c0_26 = arith.constant 0 : index
    %c0_27 = arith.constant 0 : index
    %29 = vector.load %arg3[%c1_25, %c0_26, %c0_27] : memref<2x144x400xbf16, #tpu.memory_space<vmem>>, vector<1x144x400xbf16>
    %30 = vector.shape_cast %29 : vector<1x144x400xbf16> to vector<144x400xbf16>
    %cst_28 = arith.constant dense<0.000000e+00> : vector<2x400xf32>
    %31 = tpu.matmul %28, %30, %cst_28 {dimension_numbers = #tpu.dot_dimension_numbers<[1], [0], [0], [1], [0, 0, 1, 1], [], []>} : vector<2x144xbf16>, vector<144x400xbf16>, vector<2x400xf32> -> vector<2x400xf32>
    %c0_29 = arith.constant 0 : index
    %c512 = arith.constant 512 : index
    %32 = vector.load %arg9[%c0_29, %c512] : memref<1x2560xf32, #tpu.memory_space<vmem>>, vector<1x400xf32>
    %33 = vector.broadcast %32 : vector<1x400xf32> to vector<2x400xf32>
    %34 = arith.addf %31, %33 : vector<2x400xf32>
    %cst_30 = arith.constant 0.000000e+00 : f32
    %35 = vector.broadcast %cst_30 : f32 to vector<2x400xf32>
    %36 = arith.maximumf %34, %35 : vector<2x400xf32>
    %37 = arith.truncf %36 : vector<2x400xf32> to vector<2x400xbf16>
    %c1_31 = arith.constant 1 : index
    %c0_32 = arith.constant 0 : index
    %c0_33 = arith.constant 0 : index
    %38 = vector.load %arg4[%c1_31, %c0_32, %c0_33] : memref<2x400x512xbf16, #tpu.memory_space<vmem>>, vector<1x400x512xbf16>
    %39 = vector.shape_cast %38 : vector<1x400x512xbf16> to vector<400x512xbf16>
    %cst_34 = arith.constant dense<0.000000e+00> : vector<2x512xf32>
    %40 = tpu.matmul %37, %39, %cst_34 {dimension_numbers = #tpu.dot_dimension_numbers<[1], [0], [0], [1], [0, 0, 1, 1], [], []>} : vector<2x400xbf16>, vector<400x512xbf16>, vector<2x512xf32> -> vector<2x512xf32>
    %c0_35 = arith.constant 0 : index
    %c1536 = arith.constant 1536 : index
    %41 = vector.load %arg9[%c0_35, %c1536] : memref<1x2560xf32, #tpu.memory_space<vmem>>, vector<1x512xf32>
    %42 = vector.broadcast %41 : vector<1x512xf32> to vector<2x512xf32>
    %43 = arith.addf %40, %42 : vector<2x512xf32>
    %cst_36 = arith.constant 0.000000e+00 : f32
    %44 = vector.broadcast %cst_36 : f32 to vector<2x512xf32>
    %45 = arith.maximumf %43, %44 : vector<2x512xf32>
    %46 = arith.truncf %45 : vector<2x512xf32> to vector<2x512xbf16>
    %c1_37 = arith.constant 1 : index
    %c0_38 = arith.constant 0 : index
    %c0_39 = arith.constant 0 : index
    %47 = vector.load %arg5[%c1_37, %c0_38, %c0_39] : memref<2x512x256xbf16, #tpu.memory_space<vmem>>, vector<1x512x256xbf16>
    %48 = vector.shape_cast %47 : vector<1x512x256xbf16> to vector<512x256xbf16>
    %cst_40 = arith.constant dense<0.000000e+00> : vector<2x256xf32>
    %49 = tpu.matmul %46, %48, %cst_40 {dimension_numbers = #tpu.dot_dimension_numbers<[1], [0], [0], [1], [0, 0, 1, 1], [], []>} : vector<2x512xbf16>, vector<512x256xbf16>, vector<2x256xf32> -> vector<2x256xf32>
    %50 = arith.addf %26, %49 : vector<2x256xf32>
    %c0_41 = arith.constant 0 : index
    %c2048 = arith.constant 2048 : index
    %51 = vector.load %arg9[%c0_41, %c2048] : memref<1x2560xf32, #tpu.memory_space<vmem>>, vector<1x256xf32>
    %52 = vector.broadcast %51 : vector<1x256xf32> to vector<2x256xf32>
    %53 = arith.addf %50, %52 : vector<2x256xf32>
    %cst_42 = arith.constant 0.000000e+00 : f32
    %54 = vector.broadcast %cst_42 : f32 to vector<2x256xf32>
    %55 = arith.maximumf %53, %54 : vector<2x256xf32>
    %56 = arith.truncf %55 : vector<2x256xf32> to vector<2x256xbf16>
    %c0_43 = arith.constant 0 : index
    %c0_44 = arith.constant 0 : index
    %57 = vector.load %arg7[%c0_43, %c0_44] : memref<256x128xbf16, #tpu.memory_space<vmem>>, vector<256x128xbf16>
    %cst_45 = arith.constant dense<0.000000e+00> : vector<2x128xf32>
    %58 = tpu.matmul %56, %57, %cst_45 {dimension_numbers = #tpu.dot_dimension_numbers<[1], [0], [0], [1], [0, 0, 1, 1], [], []>} : vector<2x256xbf16>, vector<256x128xbf16>, vector<2x128xf32> -> vector<2x128xf32>
    %c0_46 = arith.constant 0 : index
    %c2304 = arith.constant 2304 : index
    %59 = vector.load %arg9[%c0_46, %c2304] : memref<1x2560xf32, #tpu.memory_space<vmem>>, vector<1x128xf32>
    %60 = vector.broadcast %59 : vector<1x128xf32> to vector<2x128xf32>
    %61 = arith.addf %58, %60 : vector<2x128xf32>
    %cst_47 = arith.constant 0.000000e+00 : f32
    %62 = vector.broadcast %cst_47 : f32 to vector<2x128xf32>
    %63 = arith.maximumf %61, %62 : vector<2x128xf32>
    %64 = arith.truncf %63 : vector<2x128xf32> to vector<2x128xbf16>
    %c0_48 = arith.constant 0 : index
    %c0_49 = arith.constant 0 : index
    %65 = vector.load %arg8[%c0_48, %c0_49] : memref<128x24xbf16, #tpu.memory_space<vmem>>, vector<128x24xbf16>
    %cst_50 = arith.constant dense<0.000000e+00> : vector<2x24xf32>
    %66 = tpu.matmul %64, %65, %cst_50 {dimension_numbers = #tpu.dot_dimension_numbers<[1], [0], [0], [1], [0, 0, 1, 1], [], []>} : vector<2x128xbf16>, vector<128x24xbf16>, vector<2x24xf32> -> vector<2x24xf32>
    %c0_51 = arith.constant 0 : index
    %c2432 = arith.constant 2432 : index
    %67 = vector.load %arg9[%c0_51, %c2432] : memref<1x2560xf32, #tpu.memory_space<vmem>>, vector<1x24xf32>
    %68 = vector.broadcast %67 : vector<1x24xf32> to vector<2x24xf32>
    %69 = arith.addf %66, %68 : vector<2x24xf32>
    %c0_52 = arith.constant 0 : index
    %c0_53 = arith.constant 0 : index
    %70 = vector.load %arg10[%c0_52, %c0_53] : memref<2x24xf32, #tpu.memory_space<vmem>>, vector<2x24xf32>
    tpu.vector_store %arg10[%c0_52, %c0_53], %69 {strides = array<i32>} : memref<2x24xf32, #tpu.memory_space<vmem>>, vector<2x24xf32>,
    return
  }
  func.func @transform_0(%arg0: i32) -> (i32, i32, i32) {
    %c0_i32 = arith.constant 0 : i32
    %c0_i32_0 = arith.constant 0 : i32
    %c0_i32_1 = arith.constant 0 : i32
    %c0_i32_2 = arith.constant 0 : i32
    return %c0_i32, %c0_i32_0, %c0_i32_1 : i32, i32, i32
  }
  func.func @transform_1(%arg0: i32) -> (i32, i32) {
    %c0_i32 = arith.constant 0 : i32
    %c0_i32_0 = arith.constant 0 : i32
    %c0_i32_1 = arith.constant 0 : i32
    return %c0_i32, %c0_i32_0 : i32, i32
  }
  func.func @transform_2(%arg0: i32) -> (i32, i32, i32) {
    %c0_i32 = arith.constant 0 : i32
    %c0_i32_0 = arith.constant 0 : i32
    %c0_i32_1 = arith.constant 0 : i32
    %c0_i32_2 = arith.constant 0 : i32
    return %c0_i32, %c0_i32_0, %c0_i32_1 : i32, i32, i32
  }
  func.func @transform_3(%arg0: i32) -> (i32, i32, i32) {
    %c0_i32 = arith.constant 0 : i32
    %c0_i32_0 = arith.constant 0 : i32
    %c0_i32_1 = arith.constant 0 : i32
    %c0_i32_2 = arith.constant 0 : i32
    return %c0_i32, %c0_i32_0, %c0_i32_1 : i32, i32, i32
  }
  func.func @transform_4(%arg0: i32) -> (i32, i32, i32) {
    %c0_i32 = arith.constant 0 : i32
    %c0_i32_0 = arith.constant 0 : i32
    %c0_i32_1 = arith.constant 0 : i32
    %c0_i32_2 = arith.constant 0 : i32
    return %c0_i32, %c0_i32_0, %c0_i32_1 : i32, i32, i32
  }
  func.func @transform_5(%arg0: i32) -> (i32, i32) {
    %c0_i32 = arith.constant 0 : i32
    %c0_i32_0 = arith.constant 0 : i32
    %c0_i32_1 = arith.constant 0 : i32
    return %c0_i32, %c0_i32_0 : i32, i32
  }
  func.func @transform_6(%arg0: i32) -> (i32, i32) {
    %c0_i32 = arith.constant 0 : i32
    %c0_i32_0 = arith.constant 0 : i32
    %c0_i32_1 = arith.constant 0 : i32
    return %c0_i32, %c0_i32_0 : i32, i32
  }
  func.func @transform_7(%arg0: i32) -> (i32, i32) {
    %c0_i32 = arith.constant 0 : i32
    %c0_i32_0 = arith.constant 0 : i32
    %c0_i32_1 = arith.constant 0 : i32
    return %c0_i32, %c0_i32_0 : i32, i32
  }
  func.func @transform_8(%arg0: i32) -> (i32, i32) {
    %c0_i32 = arith.constant 0 : i32
    %c0_i32_0 = arith.constant 0 : i32
    %c0_i32_1 = arith.constant 0 : i32
    return %c0_i32, %c0_i32_0 : i32, i32
  }
  func.func @transform_9(%arg0: i32) -> (i32, i32) {
    %c0_i32 = arith.constant 0 : i32
    %c0_i32_0 = arith.constant 0 : i32
    %c0_i32_1 = arith.constant 0 : i32
    return %c0_i32, %c0_i32_0 : i32, i32
  }
}

</mosaic_0001>

<bundles_post_ra>
// kernel: dqn_forward.1
= control target key start
LH: loop header
LB: loop body
LE: loop exit
PB: predicated region body
PF: predicated region fallthrough
CT: control target
= control target key end

     0   :  { %14 = vsyncpa [#allocation3], 0  ;;  %s5188_s0 = inlined_call_operand.vmem [shape: bf16[2,2,144], index: 0, kind: input, shape index: {}]   ;;  %s5189_s1 = inlined_call_operand.vmem [shape: bf16[2,8], index: 1, kind: input, shape index: {}]   ;;  %s5190_s2 = inlined_call_operand.hbm [shape: bf16[2,144,400], index: 2, kind: input, shape index: {}]   ;;  %s5191_s3 = inlined_call_operand.hbm [shape: bf16[2,400,512], index: 3, kind: input, shape index: {}]   ;;  %s5192_s4 = inlined_call_operand.hbm [shape: bf16[2,512,256], index: 4, kind: input, shape index: {}]   ;;  %s5193_s5 = inlined_call_operand.vmem [shape: bf16[8,256], index: 5, kind: input, shape index: {}]   ;;  %s5194_s6 = inlined_call_operand.vmem [shape: bf16[256,128], index: 6, kind: input, shape index: {}]   ;;  %s5195_s7 = inlined_call_operand.vmem [shape: bf16[128,24], index: 7, kind: input, shape index: {}]   ;;  %s5196_s8 = inlined_call_operand.vmem [shape: f32[1,2560], index: 8, kind: input, shape index: {}]   ;;  %s5197_s9 = inlined_call_operand.hbm [shape: f32[2,24], index: 9, kind: output, shape index: {}]  }
   0x1   :  { %15 = vsyncpa [#allocation6], 0 }
   0x2   :  { %16 = vsyncpa [#allocation4], 0  ;;  %s4919_s30 = smov [#allocation5]   ;;  %s4920_s11 = smov [#allocation2]  }
   0x3   :  { %s38_s10 = sshll.u32 %s4919_s30, 4  ;;  %s26_s12 = sshll.u32 %s4920_s11, 4  ;;  %s39_s10 = int_to_ptr.vmem [resolvable:$true] %s38_s10  ;;  %s27_s12 = int_to_ptr.vmem [resolvable:$true] %s26_s12 }
   0x4   :  { %s4841_s13 = scalar_lea.vmem %s39_s10, 25600  ;;  %p4846_p1 = scmp.lt.s32.totalorder %s39_s10, %s39_s10 }
   0x5   :  { %p4842_p0 = scmp.ne.s32.totalorder %s39_s10, %s4841_s13  ;;  %p4847_p2 = scmp.lt.s32.totalorder %s4841_s13, %s4841_s13 }
   0x7   :  { %p4848_p3 = por %p4847_p2, %p4846_p1 }
   0x9   :  { %p4849_p4 = pnand %p4848_p3, %p4842_p0 }
   0xb   :  { %4852 = shalt.err (!%p4849_p4)
}
   0xc   :  { %s4921_s14 = smov 256   ;;  %s4922_s15 = smov 16  }
   0xd   :  { %44 = dma.hbm_to_vmem [thread:$0]  %s5191_s3, 25600, %s39_s10, [#allocation6], %s4921_s14, %s4921_s14, %s4922_s15  }
   0xe   :  { %s4861_s18 = scalar_lea.vmem %s27_s12, 9216  ;;  %p4866_p6 = scmp.lt.s32.totalorder %s27_s12, %s27_s12 }
   0xf   :  { %p4862_p5 = scmp.ne.s32.totalorder %s27_s12, %s4861_s18  ;;  %p4867_p7 = scmp.lt.s32.totalorder %s4861_s18, %s4861_s18 }
  0x11   :  { %p4868_p8 = por %p4867_p7, %p4866_p6 }
  0x13   :  { %p4869_p9 = pnand %p4868_p8, %p4862_p5 }
  0x15   :  { %4872 = shalt.err (!%p4869_p9)
}
  0x16   :  { %32 = dma.hbm_to_vmem [thread:$0]  %s5190_s2, 9216, %s27_s12, [#allocation3], %s4921_s14, %s4921_s14, %s4922_s15  }
  0x17   :  { %s4923_s21 = smov [#allocation7]  }
  0x18   :  { %s50_s22 = sshll.u32 %s4923_s21, 4  ;;  %s51_s22 = int_to_ptr.vmem [resolvable:$true] %s50_s22 }
  0x19   :  { %s4881_s23 = scalar_lea.vmem %s51_s22, 16384  ;;  %p4886_p11 = scmp.lt.s32.totalorder %s51_s22, %s51_s22 }
  0x1a   :  { %p4882_p10 = scmp.ne.s32.totalorder %s51_s22, %s4881_s23  ;;  %p4887_p12 = scmp.lt.s32.totalorder %s4881_s23, %s4881_s23 }
  0x1c   :  { %p4888_p13 = por %p4887_p12, %p4886_p11 }
  0x1e   :  { %p4889_p0 = pnand %p4888_p13, %p4882_p10 }
  0x20   :  { %4892 = shalt.err (!%p4889_p0)
}
  0x21   :  { %s4924_s3 = smov 128   ;;  %s4925_s24 = smov 8  }
  0x22   :  { %56 = dma.hbm_to_vmem [thread:$0]  %s5192_s4, 16384, %s51_s22, [#allocation6], %s4924_s3, %s4924_s3, %s4925_s24  }
  0x23   :  { %4913 = dma.done.wait [#allocation3], 9216  }
  0x24   :  { %4914 = vsyncadd [#allocation3], 4294958080 }
  0x25   :  { %4915 = dma.done.wait [#allocation6], 41984  }
  0x26   :  { %4916 = vsyncadd [#allocation6], 4294925312  ;;  %v4207_v0 = vld [vmem:[#allocation2 + $0xe4] ss:$16 sps:$4 sm:$0xff]   ;;  %v4209_v1 = vld [vmem:[#allocation2 + $0xec] ss:$16 sps:$4 sm:$0xff]   ;;  %v116_v20 = vlaneseq }
  0x27   :  { %344 = vmatprep.subr.bf16.mxu0 %v4207_v0  ;;  %v4211_v2 = vld [vmem:[#allocation2 + $0xe0] ss:$16 sps:$4 sm:$0xff]   ;;  %v4212_v3 = vld [vmem:[#allocation2 + $0xe8] ss:$16 sps:$4 sm:$0xff]   ;;  %385 = vmatprep.subr.bf16.mxu1 %v4209_v1  ;;  %v4213_v4 = vld [vmem:[#allocation2 + $0xc4] ss:$16 sps:$4 sm:$0xff]  }
  0x28   :  { %345 = vmatpush1.bf16.msra.mxu0 %v4211_v2  ;;  %386 = vmatpush1.bf16.msra.mxu1 %v4212_v3  ;;  %v4215_v5 = vld [vmem:[#allocation2 + $0xcc] ss:$16 sps:$4 sm:$0xff]   ;;  %v4217_v6 = vld [vmem:[#allocation2 + $0xc0] ss:$16 sps:$4 sm:$0xff]   ;;  %v4218_v7 = vld [vmem:[#allocation2 + $0xc8] ss:$16 sps:$4 sm:$0xff]  }
  0x29   :  { %346 = vmatprep.subr.bf16.mxu0 %v4213_v4  ;;  %387 = vmatprep.subr.bf16.mxu1 %v4215_v5  ;;  %v4219_v8 = vld [vmem:[#allocation2 + $0xa4] ss:$16 sps:$4 sm:$0xff]   ;;  %v4221_v9 = vld [vmem:[#allocation2 + $0xac] ss:$16 sps:$4 sm:$0xff]   ;;  %v4223_v10 = vld [vmem:[#allocation2 + $0xa0] ss:$16 sps:$4 sm:$0xff]  }
  0x2a   :  { %v4224_v11 = vld [vmem:[#allocation2 + $0xa8] ss:$16 sps:$4 sm:$0xff]   ;;  %v4225_v12 = vld [vmem:[#allocation2 + $0x84] ss:$16 sps:$4 sm:$0xff]   ;;  %v4227_v13 = vld [vmem:[#allocation2 + $0x8c] ss:$16 sps:$4 sm:$0xff]  }
  0x2b   :  { %v4229_v14 = vld [vmem:[#allocation2 + $0x80] ss:$16 sps:$4 sm:$0xff]   ;;  %v4230_v15 = vld [vmem:[#allocation2 + $0x88] ss:$16 sps:$4 sm:$0xff]   ;;  %v4231_v16 = vld [vmem:[#allocation2 + $0x64] ss:$16 sps:$4 sm:$0xff]  }
  0x2c   :  { %347 = vmatpush1.bf16.msra.mxu0 %v4217_v6  ;;  %388 = vmatpush1.bf16.msra.mxu1 %v4218_v7  ;;  %v4233_v17 = vld [vmem:[#allocation2 + $0x6c] ss:$16 sps:$4 sm:$0xff]   ;;  %v4235_v18 = vld [vmem:[#allocation2 + $0x60] ss:$16 sps:$4 sm:$0xff]   ;;  %v4236_v19 = vld [vmem:[#allocation2 + $0x68] ss:$16 sps:$4 sm:$0xff]  }
  0x2d   :  { %348 = vmatprep.subr.bf16.mxu0 %v4219_v8  ;;  %389 = vmatprep.subr.bf16.mxu1 %v4221_v9  ;;  %v4926_v21 = vmov 1966171168   ;;  %v4237_v23 = vld [vmem:[#allocation2 + $0x44] ss:$16 sps:$4 sm:$0xff]   ;;  %v4239_v24 = vld [vmem:[#allocation2 + $0x4c] ss:$16 sps:$4 sm:$0xff]  }
  0x2e   :  { %v146_v22 = vunpack.c.l.s4 %v4926_v21  ;;  %v4241_v25 = vld [vmem:[#allocation2 + $0x40] ss:$16 sps:$4 sm:$0xff]   ;;  %v4990_v26 = vshrl.u32 %v116_v20, 7  ;;  %v4242_v28 = vld [vmem:[#allocation2 + $0x48] ss:$16 sps:$4 sm:$0xff]   ;;  %vm340_vm0 = vcmask 130048  }
  0x2f   :  { %v4243_v29 = vld [vmem:[#allocation2 + $0x24] ss:$16 sps:$4 sm:$0xff]   ;;  %v4245_v30 = vld [vmem:[#allocation2 + $0x2c] ss:$16 sps:$4 sm:$0xff]   ;;  %v4247_v31 = vld [vmem:[#allocation2 + $0x20] ss:$16 sps:$4 sm:$0xff]  }
  0x30   :  { %349 = vmatpush1.bf16.msra.mxu0 %v4223_v10  ;;  %390 = vmatpush1.bf16.msra.mxu1 %v4224_v11  ;;  %v147_v27 = vunpack.c.0.s8 %v146_v22  ;;  %v4248_v32 = vld [vmem:[#allocation2 + $0x28] ss:$16 sps:$4 sm:$0xff]   ;;  %v3703_v34 = vld.sshfl [vmem:[%s5188_s0] sm:$0x11 pattern:$0x75316420] }
  0x31   :  { %350 = vmatprep.subr.bf16.mxu0 %v4225_v12  ;;  %391 = vmatprep.subr.bf16.mxu1 %v4227_v13  ;;  %v4249_v35 = vld [vmem:[#allocation2 + $0x4] ss:$16 sps:$4 sm:$0xff]   ;;  %v4251_v36 = vld [vmem:[#allocation2 + $0xc] ss:$16 sps:$4 sm:$0xff]   ;;  %v144_v37 = vcombine.high %v3703_v34, %v3703_v34  ;;  %v4253_v38 = vld [vmem:[#allocation2] ss:$16 sps:$4 sm:$0xff]  }
  0x32   :  { %v4993_v33 = vsub.s32 %v147_v27, %v4990_v26  ;;  %v4254_v40 = vld [vmem:[#allocation2 + $0x8] ss:$16 sps:$4 sm:$0xff]   ;;  %v4255_v41 = vld [vmem:[#allocation2 + $0x104] ss:$16 sps:$4 sm:$0xff]   ;;  %v4257_v42 = vld [vmem:[#allocation2 + $0x10c] ss:$16 sps:$4 sm:$0xff]  }
  0x33   :  { %v4259_v43 = vld [vmem:[#allocation2 + $0x100] ss:$16 sps:$4 sm:$0xff]   ;;  %v4260_v44 = vld [vmem:[#allocation2 + $0x108] ss:$16 sps:$4 sm:$0xff]   ;;  %v4263_v45 = vld [vmem:[#allocation5 + $0xe4] ss:$16 sps:$4 sm:$0xff]  }
  0x34   :  { %351 = vmatpush1.bf16.msra.mxu0 %v4229_v14  ;;  %392 = vmatpush1.bf16.msra.mxu1 %v4230_v15  ;;  %v158_v39 = vrot.slane %v144_v37, %v4993_v33  ;;  %v4261_v46 = vld [vmem:[#allocation5 + $0xe0] ss:$16 sps:$4 sm:$0xff]   ;;  %v151_v47 = vrot.slane %v3703_v34, %v4993_v33  ;;  %v4287_v49 = vld [vmem:[#allocation5 + $0x2e4] ss:$16 sps:$4 sm:$0xff]   ;;  %v4338_v34 = vld [vmem:[#allocation5 + $0xec] ss:$16 sps:$4 sm:$0xff]  }
  0x35   :  { %352 = vmatprep.subr.bf16.mxu0 %v4231_v16  ;;  %393 = vmatprep.subr.bf16.mxu1 %v4233_v17  ;;  %v4285_v48 = vld [vmem:[#allocation5 + $0x2e0] ss:$16 sps:$4 sm:$0xff]   ;;  %v4266_v50 = vld [vmem:[#allocation5 + $0xc4] ss:$16 sps:$4 sm:$0xff]   ;;  %v5006_v37 = vsub.s32 2, %v4990_v26  ;;  %vm1706_vm1 = vcmask 1043456  }
  0x36   :  { %3740 = vmatprep.mubr.msk.bf16.mxu0 %vm340_vm0, %v158_v39  ;;  %3741 = vmatprep.mubr.msk.bf16.mxu1 %vm340_vm0, %v158_v39  ;;  %v4293_v51 = vld [vmem:[#allocation5 + $0x2c4] ss:$16 sps:$4 sm:$0xff]   ;;  %v4264_v52 = vld [vmem:[#allocation5 + $0xc0] ss:$16 sps:$4 sm:$0xff]   ;;  %v5012_v39 = vsub.s32 1, %v4990_v26  ;;  %vm1702_vm2 = vcmask 64512  }
  0x37   :  { %v4291_v53 = vld [vmem:[#allocation5 + $0x2c0] ss:$16 sps:$4 sm:$0xff]   ;;  %v4269_v54 = vld [vmem:[#allocation5 + $0xa4] ss:$16 sps:$4 sm:$0xff]   ;;  %vm4929_vm3 = vmmov 0   ;;  %vm3685_vm4 = vcmask 189440  }
  0x38   :  { %353 = vmatpush1.bf16.msra.mxu0 %v4235_v18  ;;  %394 = vmatpush1.bf16.msra.mxu1 %v4236_v19  ;;  %v4299_v55 = vld [vmem:[#allocation5 + $0x2a4] ss:$16 sps:$4 sm:$0xff]   ;;  %v4267_v56 = vld [vmem:[#allocation5 + $0xa0] ss:$16 sps:$4 sm:$0xff]  }
  0x39   :  { %354 = vmatprep.subr.bf16.mxu0 %v4237_v23  ;;  %395 = vmatprep.subr.bf16.mxu1 %v4239_v24  ;;  %v4297_v57 = vld [vmem:[#allocation5 + $0x2a0] ss:$16 sps:$4 sm:$0xff]   ;;  %v4272_v58 = vld [vmem:[#allocation5 + $0x84] ss:$16 sps:$4 sm:$0xff]  }
  0x3a   :  { %v4305_v59 = vld [vmem:[#allocation5 + $0x284] ss:$16 sps:$4 sm:$0xff]   ;;  %v4270_v60 = vld [vmem:[#allocation5 + $0x80] ss:$16 sps:$4 sm:$0xff]  }
  0x3b   :  { %v4303_v61 = vld [vmem:[#allocation5 + $0x280] ss:$16 sps:$4 sm:$0xff]   ;;  %v4275_v62 = vld [vmem:[#allocation5 + $0x64] ss:$16 sps:$4 sm:$0xff]  }
  0x3c   :  { %355 = vmatpush1.bf16.msra.mxu0 %v4241_v25  ;;  %396 = vmatpush1.bf16.msra.mxu1 %v4242_v28  ;;  %v4311_v63 = vld [vmem:[#allocation5 + $0x264] ss:$16 sps:$4 sm:$0xff]   ;;  %v4273_v0 = vld [vmem:[#allocation5 + $0x60] ss:$16 sps:$4 sm:$0xff]  }
  0x3d   :  { %356 = vmatprep.subr.bf16.mxu0 %v4243_v29  ;;  %397 = vmatprep.subr.bf16.mxu1 %v4245_v30  ;;  %v4278_v1 = vld [vmem:[#allocation5 + $0x44] ss:$16 sps:$4 sm:$0xff]   ;;  %v4309_v2 = vld [vmem:[#allocation5 + $0x260] ss:$16 sps:$4 sm:$0xff]  }
  0x3e   :  { %v4317_v3 = vld [vmem:[#allocation5 + $0x244] ss:$16 sps:$4 sm:$0xff]   ;;  %v4276_v4 = vld [vmem:[#allocation5 + $0x40] ss:$16 sps:$4 sm:$0xff]  }
  0x3f   :  { %v4315_v5 = vld [vmem:[#allocation5 + $0x240] ss:$16 sps:$4 sm:$0xff]   ;;  %v4281_v6 = vld [vmem:[#allocation5 + $0x24] ss:$16 sps:$4 sm:$0xff]  }
  0x40   :  { %357 = vmatpush1.bf16.msra.mxu0 %v4247_v31  ;;  %398 = vmatpush1.bf16.msra.mxu1 %v4248_v32  ;;  %v4323_v7 = vld [vmem:[#allocation5 + $0x224] ss:$16 sps:$4 sm:$0xff]   ;;  %v4279_v8 = vld [vmem:[#allocation5 + $0x20] ss:$16 sps:$4 sm:$0xff]  }
  0x41   :  { %358 = vmatprep.subr.bf16.mxu0 %v4249_v35  ;;  %399 = vmatprep.subr.bf16.mxu1 %v4251_v36  ;;  %v4321_v9 = vld [vmem:[#allocation5 + $0x220] ss:$16 sps:$4 sm:$0xff]   ;;  %v4284_v10 = vld [vmem:[#allocation5 + $0x4] ss:$16 sps:$4 sm:$0xff]   ;;  %v4341_v35 = vld [vmem:[#allocation5 + $0x2ec] ss:$16 sps:$4 sm:$0xff]  }
  0x42   :  { %v4282_v11 = vld [vmem:[#allocation5] ss:$16 sps:$4 sm:$0xff]   ;;  %v4290_v12 = vld [vmem:[#allocation5 + $0x1e4] ss:$16 sps:$4 sm:$0xff]   ;;  %v5003_v36 = vsub.s32 0, %v4990_v26 }
  0x43   :  { %v4288_v13 = vld [vmem:[#allocation5 + $0x1e0] ss:$16 sps:$4 sm:$0xff]   ;;  %v4296_v14 = vld [vmem:[#allocation5 + $0x1c4] ss:$16 sps:$4 sm:$0xff]  }
  0x44   :  { %359 = vmatpush1.bf16.msra.mxu0 %v4253_v38  ;;  %400 = vmatpush1.bf16.msra.mxu1 %v4254_v40  ;;  %v4294_v15 = vld [vmem:[#allocation5 + $0x1c0] ss:$16 sps:$4 sm:$0xff]   ;;  %v4302_v16 = vld [vmem:[#allocation5 + $0x1a4] ss:$16 sps:$4 sm:$0xff]   ;;  %v5015_v40 = vsub.s32 3, %v4990_v26 }
  0x45   :  { %374 = vmatprep.subr.bf16.mxu0 %v4255_v41  ;;  %415 = vmatprep.subr.bf16.mxu1 %v4257_v42  ;;  %v4300_v17 = vld [vmem:[#allocation5 + $0x1a0] ss:$16 sps:$4 sm:$0xff]   ;;  %v4308_v18 = vld [vmem:[#allocation5 + $0x184] ss:$16 sps:$4 sm:$0xff]  }
  0x46   :  { %v4306_v19 = vld [vmem:[#allocation5 + $0x180] ss:$16 sps:$4 sm:$0xff]   ;;  %v4314_v20 = vld [vmem:[#allocation5 + $0x164] ss:$16 sps:$4 sm:$0xff]  }
  0x47   :  { %v4312_v21 = vld [vmem:[#allocation5 + $0x160] ss:$16 sps:$4 sm:$0xff]   ;;  %v4320_v22 = vld [vmem:[#allocation5 + $0x144] ss:$16 sps:$4 sm:$0xff]  }
  0x48   :  { %375 = vmatpush2.bf16.msra.mxu0 %v4259_v43  ;;  %416 = vmatpush2.bf16.msra.mxu1 %v4260_v44  ;;  %v4318_v23 = vld [vmem:[#allocation5 + $0x140] ss:$16 sps:$4 sm:$0xff]   ;;  %v4326_v24 = vld [vmem:[#allocation5 + $0x124] ss:$16 sps:$4 sm:$0xff]  }
  0x49   :  { %1059 = vmatprep.subr.bf16.mxu0 %v4263_v45  ;;  %1100 = vmatprep.subr.bf16.mxu1 %v4287_v49  ;;  %v4329_v25 = vld [vmem:[#allocation5 + $0x204] ss:$16 sps:$4 sm:$0xff]   ;;  %v4324_v27 = vld [vmem:[#allocation5 + $0x120] ss:$16 sps:$4 sm:$0xff]  }
  0x4a   :  { %v4327_v28 = vld [vmem:[#allocation5 + $0x200] ss:$16 sps:$4 sm:$0xff]   ;;  %v4332_v29 = vld [vmem:[#allocation5 + $0x104] ss:$16 sps:$4 sm:$0xff]  }
  0x4b   :  { %377 = vmatmul.mubr.bf16.vlgmr.msra.gmra.mxu0 %v151_v47  ;;  %418 = vmatmul.mubr.bf16.vlgmr.msra.gmra.mxu1 %v151_v47  ;;  %v4335_v30 = vld [vmem:[#allocation5 + $0x304] ss:$16 sps:$4 sm:$0xff]   ;;  %v4330_v31 = vld [vmem:[#allocation5 + $0x100] ss:$16 sps:$4 sm:$0xff]  }
  0x4c   :  { %1060 = vmatpush1.bf16.msra.mxu0 %v4261_v46  ;;  %1101 = vmatpush1.bf16.msra.mxu1 %v4285_v48  ;;  %v4333_v32 = vld [vmem:[#allocation5 + $0x300] ss:$16 sps:$4 sm:$0xff]  }
  0x4d   :  { %1061 = vmatprep.subr.bf16.mxu0 %v4266_v50  ;;  %1102 = vmatprep.subr.bf16.mxu1 %v4293_v51  ;;  %v114_v38 = vld [vmem:[%s5196_s8] sm:$0xf] }
  0x4e   :  { %v119_v41 = vrot.slane %v114_v38, %v5003_v36  ;;  %v127_v42 = vrot.slane %v114_v38, %v5006_v37  ;;  %v123_v43 = vrot.slane %v114_v38, %v5012_v39  ;;  %v131_v44 = vrot.slane %v114_v38, %v5015_v40  ;;  %v4392_v38 = vld [vmem:[#allocation5 + $0x1cc] ss:$16 sps:$4 sm:$0xff]  }
  0x50   :  { %1062 = vmatpush1.bf16.msra.mxu0 %v4264_v52  ;;  %1103 = vmatpush1.bf16.msra.mxu1 %v4291_v53 }
  0x51   :  { %1063 = vmatprep.subr.bf16.mxu0 %v4269_v54  ;;  %1104 = vmatprep.subr.bf16.mxu1 %v4299_v55 }
  0x54   :  { %1064 = vmatpush1.bf16.msra.mxu0 %v4267_v56  ;;  %1105 = vmatpush1.bf16.msra.mxu1 %v4297_v57 }
  0x55   :  { %1065 = vmatprep.subr.bf16.mxu0 %v4272_v58  ;;  %1106 = vmatprep.subr.bf16.mxu1 %v4305_v59 }
  0x58   :  { %1066 = vmatpush1.bf16.msra.mxu0 %v4270_v60  ;;  %1107 = vmatpush1.bf16.msra.mxu1 %v4303_v61 }
  0x59   :  { %1067 = vmatprep.subr.bf16.mxu0 %v4275_v62  ;;  %1108 = vmatprep.subr.bf16.mxu1 %v4311_v63  ;;  %v4336_v63 = vld [vmem:[#allocation5 + $0xe8] ss:$16 sps:$4 sm:$0xff]  }
  0x5c   :  { %1068 = vmatpush1.bf16.msra.mxu0 %v4273_v0  ;;  %1109 = vmatpush1.bf16.msra.mxu1 %v4309_v2  ;;  %v4339_v0 = vld [vmem:[#allocation5 + $0x2e8] ss:$16 sps:$4 sm:$0xff]   ;;  %v4344_v2 = vld [vmem:[#allocation5 + $0xcc] ss:$16 sps:$4 sm:$0xff]  }
  0x5d   :  { %1069 = vmatprep.subr.bf16.mxu0 %v4278_v1  ;;  %1110 = vmatprep.subr.bf16.mxu1 %v4317_v3  ;;  %v4347_v3 = vld [vmem:[#allocation5 + $0x2cc] ss:$16 sps:$4 sm:$0xff]  }
  0x60   :  { %1070 = vmatpush1.bf16.msra.mxu0 %v4276_v4  ;;  %1111 = vmatpush1.bf16.msra.mxu1 %v4315_v5  ;;  %v4342_v4 = vld [vmem:[#allocation5 + $0xc8] ss:$16 sps:$4 sm:$0xff]  }
  0x61   :  { %1071 = vmatprep.subr.bf16.mxu0 %v4281_v6  ;;  %1112 = vmatprep.subr.bf16.mxu1 %v4323_v7  ;;  %v4345_v5 = vld [vmem:[#allocation5 + $0x2c8] ss:$16 sps:$4 sm:$0xff]   ;;  %v4350_v6 = vld [vmem:[#allocation5 + $0xac] ss:$16 sps:$4 sm:$0xff]  }
  0x62   :  { %v4353_v7 = vld [vmem:[#allocation5 + $0x2ac] ss:$16 sps:$4 sm:$0xff]  }
  0x64   :  { %1072 = vmatpush1.bf16.msra.mxu0 %v4279_v8  ;;  %1113 = vmatpush1.bf16.msra.mxu1 %v4321_v9  ;;  %v4348_v8 = vld [vmem:[#allocation5 + $0xa8] ss:$16 sps:$4 sm:$0xff]  }
  0x65   :  { %1073 = vmatprep.subr.bf16.mxu0 %v4284_v10  ;;  %1114 = vmatprep.subr.bf16.mxu1 %v4329_v25  ;;  %v4351_v9 = vld [vmem:[#allocation5 + $0x2a8] ss:$16 sps:$4 sm:$0xff]   ;;  %v4356_v10 = vld [vmem:[#allocation5 + $0x8c] ss:$16 sps:$4 sm:$0xff]  }
  0x66   :  { %v4375_v25 = vld [vmem:[#allocation5 + $0x228] ss:$16 sps:$4 sm:$0xff]  }
  0x68   :  { %1074 = vmatpush1.bf16.msra.mxu0 %v4282_v11  ;;  %1115 = vmatpush1.bf16.msra.mxu1 %v4327_v28  ;;  %v4359_v11 = vld [vmem:[#allocation5 + $0x28c] ss:$16 sps:$4 sm:$0xff]  }
  0x69   :  { %1075 = vmatprep.subr.bf16.mxu0 %v4290_v12  ;;  %1130 = vmatprep.subr.bf16.mxu1 %v4335_v30  ;;  %v4354_v12 = vld [vmem:[#allocation5 + $0x88] ss:$16 sps:$4 sm:$0xff]   ;;  %v4383_v28 = vld [vmem:[#allocation5 + $0x20c] ss:$16 sps:$4 sm:$0xff]  }
  0x6a   :  { %v4381_v30 = vld [vmem:[#allocation5 + $0x208] ss:$16 sps:$4 sm:$0xff]  }
  0x6c   :  { %1076 = vmatpush2.bf16.msra.mxu0 %v4288_v13  ;;  %1131 = vmatpush2.bf16.msra.mxu1 %v4333_v32  ;;  %v4357_v13 = vld [vmem:[#allocation5 + $0x288] ss:$16 sps:$4 sm:$0xff]   ;;  %v4389_v32 = vld [vmem:[#allocation5 + $0x30c] ss:$16 sps:$4 sm:$0xff]  }
  0x6d   :  { %1077 = vmatprep.subr.bf16.mxu0 %v4296_v14  ;;  %1141 = vmatprep.subr.bf16.mxu1 %v4338_v34  ;;  %v4362_v14 = vld [vmem:[#allocation5 + $0x6c] ss:$16 sps:$4 sm:$0xff]   ;;  %v4384_v34 = vld [vmem:[#allocation5 + $0x1e8] ss:$16 sps:$4 sm:$0xff]  }
  0x70   :  { %1078 = vmatpush2.bf16.msra.mxu0 %v4294_v15  ;;  %v4365_v15 = vld [vmem:[#allocation5 + $0x26c] ss:$16 sps:$4 sm:$0xff]  }
  0x71   :  { %1079 = vmatprep.subr.bf16.mxu0 %v4302_v16  ;;  %v4360_v16 = vld [vmem:[#allocation5 + $0x68] ss:$16 sps:$4 sm:$0xff]  }
  0x74   :  { %1080 = vmatpush2.bf16.msra.mxu0 %v4300_v17  ;;  %v4363_v17 = vld [vmem:[#allocation5 + $0x268] ss:$16 sps:$4 sm:$0xff]  }
  0x75   :  { %1081 = vmatprep.subr.bf16.mxu0 %v4308_v18  ;;  %v4368_v18 = vld [vmem:[#allocation5 + $0x4c] ss:$16 sps:$4 sm:$0xff]  }
  0x78   :  { %1082 = vmatpush2.bf16.msra.mxu0 %v4306_v19  ;;  %v4371_v19 = vld [vmem:[#allocation5 + $0x24c] ss:$16 sps:$4 sm:$0xff]  }
  0x79   :  { %1083 = vmatprep.subr.bf16.mxu0 %v4314_v20  ;;  %v4366_v20 = vld [vmem:[#allocation5 + $0x48] ss:$16 sps:$4 sm:$0xff]  }
  0x7c   :  { %1084 = vmatpush2.bf16.msra.mxu0 %v4312_v21  ;;  %v4369_v21 = vld [vmem:[#allocation5 + $0x248] ss:$16 sps:$4 sm:$0xff]  }
  0x7d   :  { %1085 = vmatprep.subr.bf16.mxu0 %v4320_v22  ;;  %v4374_v22 = vld [vmem:[#allocation5 + $0x2c] ss:$16 sps:$4 sm:$0xff]  }
  0x80   :  { %1086 = vmatpush2.bf16.msra.mxu0 %v4318_v23  ;;  %v4377_v23 = vld [vmem:[#allocation5 + $0x22c] ss:$16 sps:$4 sm:$0xff]  }
  0x81   :  { %1087 = vmatprep.subr.bf16.mxu0 %v4326_v24  ;;  %v4372_v24 = vld [vmem:[#allocation5 + $0x28] ss:$16 sps:$4 sm:$0xff]  }
  0x84   :  { %1088 = vmatpush2.bf16.msra.mxu0 %v4324_v27  ;;  %v4380_v27 = vld [vmem:[#allocation5 + $0xc] ss:$16 sps:$4 sm:$0xff]  }
  0x85   :  { %1089 = vmatprep.subr.bf16.mxu0 %v4332_v29  ;;  %v4378_v29 = vld [vmem:[#allocation5 + $0x8] ss:$16 sps:$4 sm:$0xff]  }
  0x88   :  { %1090 = vmatpush2.bf16.msra.mxu0 %v4330_v31  ;;  %v4386_v31 = vld [vmem:[#allocation5 + $0x1ec] ss:$16 sps:$4 sm:$0xff]  }
  0x89   :  { %1182 = vmatprep.subr.bf16.mxu0 %v4341_v35  ;;  %v4387_v35 = vld [vmem:[#allocation5 + $0x308] ss:$16 sps:$4 sm:$0xff]  }
 0x10b   :  { %v378_v45 = vpop.f32.mrf.mxu0  ;;  %v419_v46 = vpop.f32.mrf.mxu1 }
 0x10c   :  { %v379_v47 = vadd.f32 %v378_v45, %v119_v41  ;;  %v420_v48 = vadd.f32 %v419_v46, %v127_v42  ;;  %v4413_v41 = vld [vmem:[#allocation7 + $0x74] ss:$8 sps:$4 sm:$0xff]   ;;  %v4390_v42 = vld [vmem:[#allocation5 + $0x1c8] ss:$16 sps:$4 sm:$0xff]   ;;  %v4416_v45 = vld [vmem:[#allocation7 + $0x64] ss:$8 sps:$4 sm:$0xff]  }
 0x10d   :  { %v380_v49 = vpop.f32.mrf.mxu0  ;;  %v421_v50 = vpop.f32.mrf.mxu1  ;;  %v4393_v46 = vld [vmem:[#allocation5 + $0x1a8] ss:$16 sps:$4 sm:$0xff]  }
 0x10e   :  { %v426_v51 = vmax.f32 %v379_v47, 0.0  ;;  %v381_v52 = vadd.f32 %v380_v49, %v123_v43  ;;  %v422_v53 = vadd.f32 %v421_v50, %v131_v44  ;;  %v428_v54 = vmax.f32 %v420_v48, 0.0  ;;  %v4411_v43 = vld [vmem:[#allocation7 + $0x70] ss:$8 sps:$4 sm:$0xff]   ;;  %v4395_v44 = vld [vmem:[#allocation5 + $0x1ac] ss:$16 sps:$4 sm:$0xff]  }
 0x10f   :  { %v423_v26 = vpop.f32.mrf.mxu1  ;;  %v382_v55 = vpop.f32.mrf.mxu0  ;;  %v4414_v47 = vld [vmem:[#allocation7 + $0x60] ss:$8 sps:$4 sm:$0xff]   ;;  %v4398_v48 = vld [vmem:[#allocation5 + $0x18c] ss:$16 sps:$4 sm:$0xff]  }
 0x110   :  { %v427_v56 = vmax.f32 %v381_v52, 0.0  ;;  %v429_v57 = vmax.f32 %v422_v53, 0.0  ;;  %v5021_v58 = vpack.c.bf16 %v426_v51, %v426_v51  ;;  %v5023_v1 = vpack.c.bf16 %v428_v54, %v428_v54  ;;  %v4419_v49 = vld [vmem:[#allocation7 + $0x54] ss:$8 sps:$4 sm:$0xff]   ;;  %v4396_v50 = vld [vmem:[#allocation5 + $0x188] ss:$16 sps:$4 sm:$0xff]  }
 0x111   :  { %v424_v59 = vpop.f32.mrf.mxu1  ;;  %v383_v60 = vpop.f32.mrf.mxu0  ;;  %v4417_v51 = vld [vmem:[#allocation7 + $0x50] ss:$8 sps:$4 sm:$0xff]   ;;  %v4401_v52 = vld [vmem:[#allocation5 + $0x16c] ss:$16 sps:$4 sm:$0xff]   ;;  %v4420_v26 = vld [vmem:[#allocation7 + $0x40] ss:$8 sps:$4 sm:$0xff]  }
 0x112   :  { %v431_v61 = vpack.c.bf16 %v427_v56, %v427_v56  ;;  %v433_v62 = vpack.c.bf16 %v429_v57, %v429_v57  ;;  %v4422_v53 = vld [vmem:[#allocation7 + $0x44] ss:$8 sps:$4 sm:$0xff]   ;;  %v4399_v54 = vld [vmem:[#allocation5 + $0x168] ss:$16 sps:$4 sm:$0xff]   ;;  %v4425_v56 = vld [vmem:[#allocation7 + $0x34] ss:$8 sps:$4 sm:$0xff]  }
 0x113   :  { %v4404_v55 = vld [vmem:[#allocation5 + $0x14c] ss:$16 sps:$4 sm:$0xff]   ;;  %v4402_v57 = vld [vmem:[#allocation5 + $0x148] ss:$16 sps:$4 sm:$0xff]  }
 0x114   :  { %1091 = vmatprep.mubr.bf16.mxu0 %v431_v61  ;;  %3842 = vmatprep.mubr.msk.bf16.mxu1 %vm340_vm0, %v433_v62  ;;  %v4423_v59 = vld [vmem:[#allocation7 + $0x30] ss:$8 sps:$4 sm:$0xff]   ;;  %v4407_v60 = vld [vmem:[#allocation5 + $0x12c] ss:$16 sps:$4 sm:$0xff]  }
 0x115   :  { %1092 = vmatmul.mubr.bf16.vlgmr.msra.gmra.mxu0 %v5021_v58  ;;  %1133 = vmatmul.mubr.bf16.vlgmr.msra.gmra.mxu1 %v5023_v1 }
 0x116   :  { %1142 = vmatpush1.bf16.msra.mxu1 %v4336_v63  ;;  %1183 = vmatpush1.bf16.msra.mxu0 %v4339_v0  ;;  %v4426_v63 = vld [vmem:[#allocation7 + $0x20] ss:$8 sps:$4 sm:$0xff]   ;;  %v4410_v0 = vld [vmem:[#allocation5 + $0x10c] ss:$16 sps:$4 sm:$0xff]  }
 0x117   :  { %3843 = vmatprep.mubr.msk.bf16.mxu0 %vm340_vm0, %v433_v62  ;;  %1143 = vmatprep.subr.bf16.mxu1 %v4344_v2  ;;  %v4405_v62 = vld [vmem:[#allocation5 + $0x128] ss:$16 sps:$4 sm:$0xff]  }
 0x118   :  { %1184 = vmatprep.subr.bf16.mxu0 %v4347_v3  ;;  %1173 = vmatprep.mubr.bf16.mxu1 %v431_v61  ;;  %v4428_v61 = vld [vmem:[#allocation7 + $0x24] ss:$8 sps:$4 sm:$0xff]   ;;  %v4408_v2 = vld [vmem:[#allocation5 + $0x108] ss:$16 sps:$4 sm:$0xff]  }
 0x119   :  { %v4429_v3 = vld [vmem:[#allocation7 + $0x10] ss:$8 sps:$4 sm:$0xff]  }
 0x11a   :  { %1144 = vmatpush1.bf16.msra.mxu1 %v4342_v4  ;;  %1185 = vmatpush1.bf16.msra.mxu0 %v4345_v5  ;;  %v4434_v4 = vld [vmem:[#allocation7 + $0x4] ss:$8 sps:$4 sm:$0xff]   ;;  %v4432_v5 = vld [vmem:[#allocation7] ss:$8 sps:$4 sm:$0xff]  }
 0x11b   :  { %1145 = vmatprep.subr.bf16.mxu1 %v4350_v6  ;;  %1186 = vmatprep.subr.bf16.mxu0 %v4353_v7  ;;  %v4437_v6 = vld [vmem:[#allocation7 + $0xf4] ss:$8 sps:$4 sm:$0xff]   ;;  %v4435_v7 = vld [vmem:[#allocation7 + $0xf0] ss:$8 sps:$4 sm:$0xff]  }
 0x11e   :  { %1146 = vmatpush1.bf16.msra.mxu1 %v4348_v8  ;;  %1187 = vmatpush1.bf16.msra.mxu0 %v4351_v9  ;;  %v4440_v8 = vld [vmem:[#allocation7 + $0xe4] ss:$8 sps:$4 sm:$0xff]   ;;  %v4438_v9 = vld [vmem:[#allocation7 + $0xe0] ss:$8 sps:$4 sm:$0xff]  }
 0x11f   :  { %1147 = vmatprep.subr.bf16.mxu1 %v4356_v10  ;;  %1188 = vmatprep.subr.bf16.mxu0 %v4359_v11  ;;  %v4443_v10 = vld [vmem:[#allocation7 + $0xd4] ss:$8 sps:$4 sm:$0xff]   ;;  %v4441_v11 = vld [vmem:[#allocation7 + $0xd0] ss:$8 sps:$4 sm:$0xff]  }
 0x122   :  { %1148 = vmatpush1.bf16.msra.mxu1 %v4354_v12  ;;  %1189 = vmatpush1.bf16.msra.mxu0 %v4357_v13  ;;  %v4459_v12 = vld [vmem:[#allocation7 + $0x170] ss:$8 sps:$4 sm:$0xff]   ;;  %v4461_v13 = vld [vmem:[#allocation7 + $0x174] ss:$8 sps:$4 sm:$0xff]  }
 0x123   :  { %1149 = vmatprep.subr.bf16.mxu1 %v4362_v14  ;;  %1190 = vmatprep.subr.bf16.mxu0 %v4365_v15  ;;  %v4446_v14 = vld [vmem:[#allocation7 + $0xc4] ss:$8 sps:$4 sm:$0xff]   ;;  %v4462_v15 = vld [vmem:[#allocation7 + $0x160] ss:$8 sps:$4 sm:$0xff]  }
 0x126   :  { %1150 = vmatpush1.bf16.msra.mxu1 %v4360_v16  ;;  %1191 = vmatpush1.bf16.msra.mxu0 %v4363_v17  ;;  %v4464_v16 = vld [vmem:[#allocation7 + $0x164] ss:$8 sps:$4 sm:$0xff]   ;;  %v4444_v17 = vld [vmem:[#allocation7 + $0xc0] ss:$8 sps:$4 sm:$0xff]  }
 0x127   :  { %1151 = vmatprep.subr.bf16.mxu1 %v4368_v18  ;;  %1192 = vmatprep.subr.bf16.mxu0 %v4371_v19  ;;  %v4469_v19 = vld [vmem:[#allocation7 + $0x154] ss:$8 sps:$4 sm:$0xff]  }
 0x12a   :  { %1152 = vmatpush1.bf16.msra.mxu1 %v4366_v20  ;;  %1193 = vmatpush1.bf16.msra.mxu0 %v4369_v21  ;;  %v4449_v20 = vld [vmem:[#allocation7 + $0xb4] ss:$8 sps:$4 sm:$0xff]  }
 0x12b   :  { %1153 = vmatprep.subr.bf16.mxu1 %v4374_v22  ;;  %1194 = vmatprep.subr.bf16.mxu0 %v4377_v23  ;;  %v4467_v22 = vld [vmem:[#allocation7 + $0x150] ss:$8 sps:$4 sm:$0xff]  }
 0x12c   :  { %v4447_v23 = vld [vmem:[#allocation7 + $0xb0] ss:$8 sps:$4 sm:$0xff]  }
 0x12e   :  { %1154 = vmatpush1.bf16.msra.mxu1 %v4372_v24  ;;  %1195 = vmatpush1.bf16.msra.mxu0 %v4375_v25  ;;  %v4452_v24 = vld [vmem:[#allocation7 + $0xa4] ss:$8 sps:$4 sm:$0xff]   ;;  %v4450_v25 = vld [vmem:[#allocation7 + $0xa0] ss:$8 sps:$4 sm:$0xff]  }
 0x12f   :  { %1155 = vmatprep.subr.bf16.mxu1 %v4380_v27  ;;  %1196 = vmatprep.subr.bf16.mxu0 %v4383_v28  ;;  %v4473_v27 = vld [vmem:[#allocation7 + $0x140] ss:$8 sps:$4 sm:$0xff]   ;;  %v4475_v28 = vld [vmem:[#allocation7 + $0x144] ss:$8 sps:$4 sm:$0xff]  }
 0x132   :  { %1156 = vmatpush1.bf16.msra.mxu1 %v4378_v29  ;;  %1197 = vmatpush1.bf16.msra.mxu0 %v4381_v30  ;;  %v4455_v29 = vld [vmem:[#allocation7 + $0x94] ss:$8 sps:$4 sm:$0xff]   ;;  %v4453_v30 = vld [vmem:[#allocation7 + $0x90] ss:$8 sps:$4 sm:$0xff]  }
 0x133   :  { %1157 = vmatprep.subr.bf16.mxu1 %v4386_v31  ;;  %1212 = vmatprep.subr.bf16.mxu0 %v4389_v32  ;;  %v4479_v31 = vld [vmem:[#allocation7 + $0x130] ss:$8 sps:$4 sm:$0xff]   ;;  %v4481_v32 = vld [vmem:[#allocation7 + $0x134] ss:$8 sps:$4 sm:$0xff]  }
 0x136   :  { %1158 = vmatpush2.bf16.msra.mxu1 %v4384_v34  ;;  %1213 = vmatpush2.bf16.msra.mxu0 %v4387_v35  ;;  %v4458_v34 = vld [vmem:[#allocation7 + $0x84] ss:$8 sps:$4 sm:$0xff]   ;;  %v4456_v35 = vld [vmem:[#allocation7 + $0x80] ss:$8 sps:$4 sm:$0xff]  }
 0x137   :  { %1159 = vmatprep.subr.bf16.mxu1 %v4392_v38  ;;  %1615 = vmatprep.subr.bf16.mxu0 %v4413_v41  ;;  %v4485_v38 = vld [vmem:[#allocation7 + $0x120] ss:$8 sps:$4 sm:$0xff]   ;;  %v4487_v41 = vld [vmem:[#allocation7 + $0x124] ss:$8 sps:$4 sm:$0xff]  }
 0x139   :  { %1215 = vmatmul.mubr.bf16.vlgmr.msra.gmra.mxu0 %v5023_v1  ;;  %v4431_v1 = vld [vmem:[#allocation7 + $0x14] ss:$8 sps:$4 sm:$0xff]  }
 0x13a   :  { %1160 = vmatpush2.bf16.msra.mxu1 %v4390_v42  ;;  %1616 = vmatpush1.bf16.msra.mxu0 %v4411_v43  ;;  %v4491_v43 = vld [vmem:[#allocation7 + $0x110] ss:$8 sps:$4 sm:$0xff]  }
 0x13b   :  { %1161 = vmatprep.subr.bf16.mxu1 %v4395_v44  ;;  %1617 = vmatprep.subr.bf16.mxu0 %v4416_v45  ;;  %v4493_v44 = vld [vmem:[#allocation7 + $0x114] ss:$8 sps:$4 sm:$0xff]   ;;  %v4499_v45 = vld [vmem:[#allocation7 + $0x104] ss:$8 sps:$4 sm:$0xff]  }
 0x13e   :  { %1162 = vmatpush2.bf16.msra.mxu1 %v4393_v46  ;;  %1618 = vmatpush1.bf16.msra.mxu0 %v4414_v47  ;;  %v4497_v46 = vld [vmem:[#allocation7 + $0x100] ss:$8 sps:$4 sm:$0xff]   ;;  %v4505_v47 = vld [vmem:[#allocation7 + $0x1f4] ss:$8 sps:$4 sm:$0xff]  }
 0x13f   :  { %1163 = vmatprep.subr.bf16.mxu1 %v4398_v48  ;;  %1619 = vmatprep.subr.bf16.mxu0 %v4419_v49  ;;  %v4503_v48 = vld [vmem:[#allocation7 + $0x1f0] ss:$8 sps:$4 sm:$0xff]   ;;  %v4509_v49 = vld [vmem:[#allocation7 + $0x1e0] ss:$8 sps:$4 sm:$0xff]  }
 0x142   :  { %1164 = vmatpush2.bf16.msra.mxu1 %v4396_v50  ;;  %1620 = vmatpush1.bf16.msra.mxu0 %v4417_v51  ;;  %v4511_v50 = vld [vmem:[#allocation7 + $0x1e4] ss:$8 sps:$4 sm:$0xff]   ;;  %v4515_v51 = vld [vmem:[#allocation7 + $0x1d0] ss:$8 sps:$4 sm:$0xff]  }
 0x143   :  { %1165 = vmatprep.subr.bf16.mxu1 %v4401_v52  ;;  %1621 = vmatprep.subr.bf16.mxu0 %v4422_v53  ;;  %v4517_v52 = vld [vmem:[#allocation7 + $0x1d4] ss:$8 sps:$4 sm:$0xff]   ;;  %v4521_v53 = vld [vmem:[#allocation7 + $0x1c0] ss:$8 sps:$4 sm:$0xff]  }
 0x146   :  { %1166 = vmatpush2.bf16.msra.mxu1 %v4399_v54  ;;  %1622 = vmatpush1.bf16.msra.mxu0 %v4420_v26  ;;  %v4523_v54 = vld [vmem:[#allocation7 + $0x1c4] ss:$8 sps:$4 sm:$0xff]   ;;  %v4524_v26 = vld [vmem:[#allocation7 + $0x1b0] ss:$8 sps:$4 sm:$0xff]  }
 0x147   :  { %1167 = vmatprep.subr.bf16.mxu1 %v4404_v55  ;;  %1623 = vmatprep.subr.bf16.mxu0 %v4425_v56  ;;  %v4526_v55 = vld [vmem:[#allocation7 + $0x1b4] ss:$8 sps:$4 sm:$0xff]   ;;  %v4529_v56 = vld [vmem:[#allocation7 + $0x1a4] ss:$8 sps:$4 sm:$0xff]  }
 0x14a   :  { %1168 = vmatpush2.bf16.msra.mxu1 %v4402_v57  ;;  %1624 = vmatpush1.bf16.msra.mxu0 %v4423_v59  ;;  %v4527_v57 = vld [vmem:[#allocation7 + $0x1a0] ss:$8 sps:$4 sm:$0xff]   ;;  %v4532_v59 = vld [vmem:[#allocation7 + $0x194] ss:$8 sps:$4 sm:$0xff]  }
 0x14b   :  { %1169 = vmatprep.subr.bf16.mxu1 %v4407_v60  ;;  %1625 = vmatprep.subr.bf16.mxu0 %v4428_v61  ;;  %v4530_v60 = vld [vmem:[#allocation7 + $0x190] ss:$8 sps:$4 sm:$0xff]   ;;  %v4535_v61 = vld [vmem:[#allocation7 + $0x184] ss:$8 sps:$4 sm:$0xff]  }
 0x14e   :  { %1170 = vmatpush2.bf16.msra.mxu1 %v4405_v62  ;;  %1626 = vmatpush1.bf16.msra.mxu0 %v4426_v63  ;;  %v4533_v62 = vld [vmem:[#allocation7 + $0x180] ss:$8 sps:$4 sm:$0xff]   ;;  %v4538_v63 = vld [vmem:[#allocation2 + $0x204] ss:$16 sps:$4 sm:$0xff]  }
 0x14f   :  { %1171 = vmatprep.subr.bf16.mxu1 %v4410_v0  ;;  %1627 = vmatprep.subr.bf16.mxu0 %v4431_v1  ;;  %v5041_v0 = vld [vmem:[%s5196_s8 + $0x8] sm:$0xf] }
 0x150   :  { %v539_v1 = vrot.slane %v5041_v0, %v5003_v36 }
 0x152   :  { %1172 = vmatpush2.bf16.msra.mxu1 %v4408_v2  ;;  %1628 = vmatpush1.bf16.msra.mxu0 %v4429_v3  ;;  %v543_v2 = vrot.slane %v5041_v0, %v5012_v39 }
 0x153   :  { %1629 = vmatprep.subr.bf16.mxu0 %v4434_v4  ;;  %1656 = vmatprep.subr.bf16.mxu1 %v4461_v13 }
 0x155   :  { %1174 = vmatmul.mubr.bf16.vlgmr.msra.gmra.mxu1 %v5021_v58  ;;  %v76_v58 = vld [vmem:[%s5193_s5] sm:$0xff] }
 0x156   :  { %1630 = vmatpush1.bf16.msra.mxu0 %v4432_v5  ;;  %1657 = vmatpush1.bf16.msra.mxu1 %v4459_v12  ;;  %v3908_v18 = vcombine.low %v76_v58, %v76_v58  ;;  %v3909_v42 = vcombine.high %v76_v58, %v76_v58 }
 0x157   :  { %1631 = vmatprep.subr.bf16.mxu0 %v4437_v6  ;;  %1658 = vmatprep.subr.bf16.mxu1 %v4464_v16 }
 0x158   :  { %v5035_v21 = vsel %vm1706_vm1, %v3908_v18, 0  ;;  %v4472_v18 = vld [vmem:[#allocation2 + $0x20c] ss:$16 sps:$4 sm:$0xff]  }
 0x15a   :  { %1632 = vmatpush2.bf16.msra.mxu0 %v4435_v7  ;;  %1659 = vmatpush1.bf16.msra.mxu1 %v4462_v15 }
 0x15b   :  { %1633 = vmatprep.subr.bf16.mxu0 %v4440_v8  ;;  %1660 = vmatprep.subr.bf16.mxu1 %v4469_v19  ;;  %v3913_v19 = vld.sshfl [vmem:[%s5188_s0 + $0x2] sm:$0x11 pattern:$0x75316420] }
 0x15e   :  { %1634 = vmatpush2.bf16.msra.mxu0 %v4438_v9  ;;  %1661 = vmatpush1.bf16.msra.mxu1 %v4467_v22  ;;  %v1823_v22 = vcombine.high %v3913_v19, %v3913_v19 }
 0x15f   :  { %1635 = vmatprep.subr.bf16.mxu0 %v4443_v10  ;;  %1662 = vmatprep.subr.bf16.mxu1 %v4475_v28  ;;  %v4476_v28 = vld [vmem:[#allocation2 + $0x1e8] ss:$16 sps:$4 sm:$0xff]  }
 0x162   :  { %1636 = vmatpush2.bf16.msra.mxu0 %v4441_v11  ;;  %1663 = vmatpush1.bf16.msra.mxu1 %v4473_v27  ;;  %v4478_v27 = vld [vmem:[#allocation2 + $0x1ec] ss:$16 sps:$4 sm:$0xff]  }
 0x163   :  { %1637 = vmatprep.subr.bf16.mxu0 %v4446_v14  ;;  %1664 = vmatprep.subr.bf16.mxu1 %v4481_v32  ;;  %v4496_v32 = vld [vmem:[#allocation2 + $0x18c] ss:$16 sps:$4 sm:$0xff]  }
 0x166   :  { %1638 = vmatpush2.bf16.msra.mxu0 %v4444_v17  ;;  %1665 = vmatpush1.bf16.msra.mxu1 %v4479_v31  ;;  %v4488_v31 = vld [vmem:[#allocation2 + $0x1a8] ss:$16 sps:$4 sm:$0xff]  }
 0x167   :  { %1639 = vmatprep.subr.bf16.mxu0 %v4449_v20  ;;  %1666 = vmatprep.subr.bf16.mxu1 %v4487_v41  ;;  %v4927_v20 = vmov 0   ;;  %v4500_v41 = vld [vmem:[#allocation2 + $0x168] ss:$16 sps:$4 sm:$0xff]  }
 0x16a   :  { %1640 = vmatpush2.bf16.msra.mxu0 %v4447_v23  ;;  %1667 = vmatpush1.bf16.msra.mxu1 %v4485_v38  ;;  %v4470_v23 = vld [vmem:[#allocation2 + $0x208] ss:$16 sps:$4 sm:$0xff]  }
 0x16b   :  { %1641 = vmatprep.subr.bf16.mxu0 %v4452_v24  ;;  %1668 = vmatprep.subr.bf16.mxu1 %v4493_v44  ;;  %v75_v24 = vld [vmem:[%s5189_s1] sm:$0x1] }
 0x16e   :  { %1642 = vmatpush2.bf16.msra.mxu0 %v4450_v25  ;;  %1669 = vmatpush1.bf16.msra.mxu1 %v4491_v43  ;;  %v1837_v25 = vrot.slane %v1823_v22, %v4993_v33  ;;  %v4508_v43 = vld [vmem:[#allocation2 + $0x14c] ss:$16 sps:$4 sm:$0xff]   ;;  %v4554_v22 = vld [vmem:[#allocation2 + $0x140] ss:$16 sps:$4 sm:$0xff]  }
 0x16f   :  { %1643 = vmatprep.subr.bf16.mxu0 %v4455_v29  ;;  %1670 = vmatprep.subr.bf16.mxu1 %v4499_v45  ;;  %v4482_v29 = vld [vmem:[#allocation2 + $0x1c8] ss:$16 sps:$4 sm:$0xff]  }
 0x170   :  { %v4506_v45 = vld [vmem:[#allocation2 + $0x148] ss:$16 sps:$4 sm:$0xff]  }
 0x172   :  { %1644 = vmatpush2.bf16.msra.mxu0 %v4453_v30  ;;  %1671 = vmatpush1.bf16.msra.mxu1 %v4497_v46  ;;  %v4490_v30 = vld [vmem:[#allocation2 + $0x1ac] ss:$16 sps:$4 sm:$0xff]  }
 0x173   :  { %1645 = vmatprep.subr.bf16.mxu0 %v4458_v34  ;;  %1672 = vmatprep.subr.bf16.mxu1 %v4505_v47  ;;  %v4494_v34 = vld [vmem:[#allocation2 + $0x188] ss:$16 sps:$4 sm:$0xff]   ;;  %v4514_v47 = vld [vmem:[#allocation2 + $0x12c] ss:$16 sps:$4 sm:$0xff]  }
 0x176   :  { %1646 = vmatpush2.bf16.msra.mxu0 %v4456_v35  ;;  %1673 = vmatpush2.bf16.msra.mxu1 %v4503_v48  ;;  %v4502_v35 = vld [vmem:[#allocation2 + $0x16c] ss:$16 sps:$4 sm:$0xff]   ;;  %v4512_v48 = vld [vmem:[#allocation2 + $0x128] ss:$16 sps:$4 sm:$0xff]  }
 0x177   :  { %3910 = vmatprep.subr.msk.bf16.mxu0 %vm1706_vm1, %v3909_v42  ;;  %1674 = vmatprep.subr.bf16.mxu1 %v4511_v50  ;;  %v4518_v50 = vld [vmem:[#allocation2 + $0x228] ss:$16 sps:$4 sm:$0xff]  }
 0x17a   :  { %1675 = vmatpush2.bf16.msra.mxu1 %v4509_v49  ;;  %v4520_v49 = vld [vmem:[#allocation2 + $0x22c] ss:$16 sps:$4 sm:$0xff]  }
 0x17b   :  { %1676 = vmatprep.subr.bf16.mxu1 %v4517_v52  ;;  %v547_v52 = vrot.slane %v5041_v0, %v5006_v37 }
 0x17e   :  { %1677 = vmatpush2.bf16.msra.mxu1 %v4515_v51  ;;  %v5057_v51 = vrot.slane %v3913_v19, %v4993_v33  ;;  %v4556_v19 = vld [vmem:[#allocation2 + $0x144] ss:$16 sps:$4 sm:$0xff]  }
 0x17f   :  { %1678 = vmatprep.subr.bf16.mxu1 %v4523_v54 }
 0x182   :  { %1679 = vmatpush2.bf16.msra.mxu1 %v4521_v53  ;;  %v551_v53 = vrot.slane %v5041_v0, %v5015_v40  ;;  %v4544_v0 = vld [vmem:[#allocation2 + $0x1c4] ss:$16 sps:$4 sm:$0xff]  }
 0x183   :  { %1680 = vmatprep.subr.bf16.mxu1 %v4526_v55 }
 0x186   :  { %1681 = vmatpush2.bf16.msra.mxu1 %v4524_v26 }
 0x187   :  { %1682 = vmatprep.subr.bf16.mxu1 %v4529_v56 }
 0x18a   :  { %1683 = vmatpush2.bf16.msra.mxu1 %v4527_v57 }
 0x18b   :  { %1684 = vmatprep.subr.bf16.mxu1 %v4532_v59 }
 0x18e   :  { %1685 = vmatpush2.bf16.msra.mxu1 %v4530_v60 }
 0x18f   :  { %1686 = vmatprep.subr.bf16.mxu1 %v4535_v61 }
 0x192   :  { %1687 = vmatpush2.bf16.msra.mxu1 %v4533_v62 }
 0x193   :  { %2022 = vmatprep.subr.bf16.mxu1 %v4538_v63 }
 0x1d5   :  { %v1093_v3 = vpop.f32.mrf.mxu0  ;;  %v1134_v4 = vpop.f32.mrf.mxu1 }
 0x1d6   :  { %v1094_v5 = vadd.f32 %v1093_v3, %v539_v1  ;;  %v4536_v1 = vld [vmem:[#allocation2 + $0x200] ss:$16 sps:$4 sm:$0xff]   ;;  %v4541_v3 = vld [vmem:[#allocation2 + $0x1e4] ss:$16 sps:$4 sm:$0xff]  }
 0x1d7   :  { %v1095_v6 = vpop.f32.mrf.mxu0  ;;  %v1136_v7 = vpop.f32.mrf.mxu1 }
 0x1d8   :  { %v1135_v8 = vadd.f32 %v1134_v4, %v1094_v5  ;;  %v1096_v9 = vadd.f32 %v1095_v6, %v543_v2  ;;  %v4539_v4 = vld [vmem:[#allocation2 + $0x1e0] ss:$16 sps:$4 sm:$0xff]   ;;  %v4547_v6 = vld [vmem:[#allocation2 + $0x1a4] ss:$16 sps:$4 sm:$0xff]  }
 0x1d9   :  { %v1138_v10 = vpop.f32.mrf.mxu1  ;;  %v1097_v11 = vpop.f32.mrf.mxu0  ;;  %v4542_v5 = vld [vmem:[#allocation2 + $0x1c0] ss:$16 sps:$4 sm:$0xff]  }
 0x1da   :  { %v1137_v12 = vadd.f32 %v1136_v7, %v1096_v9  ;;  %v1223_v13 = vmax.f32 %v1135_v8, 0.0  ;;  %v4563_v7 = vld [vmem:[#allocation5 + $0x600] ss:$16 sps:$4 sm:$0xff]   ;;  %v4565_v8 = vld [vmem:[#allocation5 + $0x604] ss:$16 sps:$4 sm:$0xff]  }
 0x1db   :  { %v1139_v14 = vpop.f32.mrf.mxu1  ;;  %v1098_v15 = vpop.f32.mrf.mxu0  ;;  %v4568_v9 = vld [vmem:[#allocation5 + $0x5e4] ss:$16 sps:$4 sm:$0xff]   ;;  %v4545_v10 = vld [vmem:[#allocation2 + $0x1a0] ss:$16 sps:$4 sm:$0xff]  }
 0x1dc   :  { %v1224_v16 = vmax.f32 %v1137_v12, 0.0  ;;  %v1227_v17 = vpack.c.bf16 %v1223_v13, %v1223_v13  ;;  %v4566_v11 = vld [vmem:[#allocation5 + $0x5e0] ss:$16 sps:$4 sm:$0xff]   ;;  %v4550_v12 = vld [vmem:[#allocation2 + $0x184] ss:$16 sps:$4 sm:$0xff]  }
 0x1dd   :  { %v4571_v13 = vld [vmem:[#allocation5 + $0x5c4] ss:$16 sps:$4 sm:$0xff]   ;;  %v4548_v14 = vld [vmem:[#allocation2 + $0x180] ss:$16 sps:$4 sm:$0xff]  }
 0x1de   :  { %v1228_v58 = vpack.c.bf16 %v1224_v16, %v1224_v16  ;;  %v4569_v15 = vld [vmem:[#allocation5 + $0x5c0] ss:$16 sps:$4 sm:$0xff]   ;;  %v4553_v16 = vld [vmem:[#allocation2 + $0x164] ss:$16 sps:$4 sm:$0xff]  }
 0x1e0   :  { %1647 = vmatprep.mubr.bf16.mxu0 %v1228_v58  ;;  %v4574_v58 = vld [vmem:[#allocation5 + $0x5a4] ss:$16 sps:$4 sm:$0xff]  }
 0x1e1   :  { %1648 = vmatmul.mubr.bf16.vlgmr.msra.gmra.mxu0 %v1227_v17  ;;  %v4551_v17 = vld [vmem:[#allocation2 + $0x160] ss:$16 sps:$4 sm:$0xff]  }
 0x1e2   :  { %1728 = vmatpush1.bf16.msra.mxu0 %v5035_v21  ;;  %1745 = vmatprep.mubr.bf16.mxu0 %v4927_v20  ;;  %v4484_v21 = vld [vmem:[#allocation2 + $0x1cc] ss:$16 sps:$4 sm:$0xff]   ;;  %v4577_v20 = vld [vmem:[#allocation5 + $0x584] ss:$16 sps:$4 sm:$0xff]  }
 0x1e3   :  { %2063 = vmatprep.subr.bf16.mxu0 %v4472_v18  ;;  %v4572_v18 = vld [vmem:[#allocation5 + $0x5a0] ss:$16 sps:$4 sm:$0xff]  }
 0x1e9   :  { %3911 = vmatmul.mubr.msk.bf16.vlgmr.msra.gmra.mxu0 %vm1702_vm2, %v75_v24  ;;  %v4559_v24 = vld [vmem:[#allocation2 + $0x124] ss:$16 sps:$4 sm:$0xff]  }
 0x1ea   :  { %2064 = vmatpush1.bf16.msra.mxu0 %v4470_v23  ;;  %3951 = vmatprep.mubr.msk.bf16.mxu0 %vm340_vm0, %v1837_v25  ;;  %v4575_v23 = vld [vmem:[#allocation5 + $0x580] ss:$16 sps:$4 sm:$0xff]  }
 0x1eb   :  { %2065 = vmatprep.subr.bf16.mxu0 %v4478_v27  ;;  %v4557_v27 = vld [vmem:[#allocation2 + $0x120] ss:$16 sps:$4 sm:$0xff]  }
 0x1ee   :  { %2066 = vmatpush1.bf16.msra.mxu0 %v4476_v28  ;;  %v4578_v28 = vld [vmem:[#allocation5 + $0x560] ss:$16 sps:$4 sm:$0xff]  }
 0x1ef   :  { %2067 = vmatprep.subr.bf16.mxu0 %v4484_v21  ;;  %v4562_v21 = vld [vmem:[#allocation2 + $0x224] ss:$16 sps:$4 sm:$0xff]  }
 0x1f2   :  { %2068 = vmatpush1.bf16.msra.mxu0 %v4482_v29  ;;  %v4583_v29 = vld [vmem:[#allocation5 + $0x544] ss:$16 sps:$4 sm:$0xff]  }
 0x1f3   :  { %2069 = vmatprep.subr.bf16.mxu0 %v4490_v30  ;;  %v4560_v30 = vld [vmem:[#allocation2 + $0x220] ss:$16 sps:$4 sm:$0xff]  }
 0x1f6   :  { %2070 = vmatpush1.bf16.msra.mxu0 %v4488_v31  ;;  %v4581_v31 = vld [vmem:[#allocation5 + $0x540] ss:$16 sps:$4 sm:$0xff]  }
 0x1f7   :  { %2071 = vmatprep.subr.bf16.mxu0 %v4496_v32  ;;  %v4586_v32 = vld [vmem:[#allocation5 + $0x404] ss:$16 sps:$4 sm:$0xff]  }
 0x1f9   :  { %v1216_v38 = vpop.f32.mrf.mxu0 }
 0x1fa   :  { %2072 = vmatpush1.bf16.msra.mxu0 %v4494_v34  ;;  %v4584_v34 = vld [vmem:[#allocation5 + $0x400] ss:$16 sps:$4 sm:$0xff]  }
 0x1fb   :  { %v1218_v42 = vpop.f32.mrf.mxu0  ;;  %2073 = vmatprep.subr.bf16.mxu0 %v4502_v35  ;;  %v4589_v35 = vld [vmem:[#allocation5 + $0x524] ss:$16 sps:$4 sm:$0xff]  }
 0x1fd   :  { %v1220_v44 = vpop.f32.mrf.mxu0 }
 0x1fe   :  { %2074 = vmatpush1.bf16.msra.mxu0 %v4500_v41  ;;  %v4592_v41 = vld [vmem:[#allocation5 + $0x3e4] ss:$16 sps:$4 sm:$0xff]   ;;  %v4593_v44 = vld [vmem:[#allocation5 + $0x620] ss:$16 sps:$4 sm:$0xff]  }
 0x1ff   :  { %v1221_v46 = vpop.f32.mrf.mxu0  ;;  %2075 = vmatprep.subr.bf16.mxu0 %v4508_v43  ;;  %v4595_v43 = vld [vmem:[#allocation5 + $0x624] ss:$16 sps:$4 sm:$0xff]  }
 0x200   :  { %v4598_v46 = vld [vmem:[#allocation5 + $0x3c4] ss:$16 sps:$4 sm:$0xff]  }
 0x202   :  { %2076 = vmatpush1.bf16.msra.mxu0 %v4506_v45  ;;  %v4596_v45 = vld [vmem:[#allocation5 + $0x3c0] ss:$16 sps:$4 sm:$0xff]  }
 0x203   :  { %2077 = vmatprep.subr.bf16.mxu0 %v4514_v47  ;;  %v4601_v47 = vld [vmem:[#allocation5 + $0x40c] ss:$16 sps:$4 sm:$0xff]  }
 0x206   :  { %2078 = vmatpush1.bf16.msra.mxu0 %v4512_v48  ;;  %v4602_v48 = vld [vmem:[#allocation5 + $0x3a0] ss:$16 sps:$4 sm:$0xff]  }
 0x207   :  { %2093 = vmatprep.subr.bf16.mxu0 %v4520_v49  ;;  %v4604_v49 = vld [vmem:[#allocation5 + $0x3a4] ss:$16 sps:$4 sm:$0xff]  }
 0x20a   :  { %2094 = vmatpush2.bf16.msra.mxu0 %v4518_v50  ;;  %v4608_v50 = vld [vmem:[#allocation5 + $0x380] ss:$16 sps:$4 sm:$0xff]  }
 0x20b   :  { %2779 = vmatprep.subr.bf16.mxu0 %v4565_v8  ;;  %v4674_v8 = vld [vmem:[#allocation5 + $0x420] ss:$16 sps:$4 sm:$0xff]  }
 0x20d   :  { %2096 = vmatmul.mubr.bf16.vlgmr.msra.gmra.mxu0 %v5057_v51 }
 0x20e   :  { %2780 = vmatpush1.bf16.msra.mxu0 %v4563_v7  ;;  %v4676_v7 = vld [vmem:[#allocation5 + $0x424] ss:$16 sps:$4 sm:$0xff]  }
 0x20f   :  { %2781 = vmatprep.subr.bf16.mxu0 %v4568_v9  ;;  %v4682_v9 = vld [vmem:[#allocation5 + $0x60c] ss:$16 sps:$4 sm:$0xff]  }
 0x212   :  { %2782 = vmatpush1.bf16.msra.mxu0 %v4566_v11 }
 0x213   :  { %2783 = vmatprep.subr.bf16.mxu0 %v4571_v13 }
 0x215   :  { %v1175_v54 = vpop.f32.mrf.mxu1 }
 0x216   :  { %v1176_v26 = vadd.f32 %v1175_v54, %v547_v52  ;;  %2784 = vmatpush1.bf16.msra.mxu0 %v4569_v15  ;;  %v4616_v52 = vld [vmem:[#allocation5 + $0x364] ss:$16 sps:$4 sm:$0xff]  }
 0x217   :  { %v1177_v55 = vpop.f32.mrf.mxu1  ;;  %2785 = vmatprep.subr.bf16.mxu0 %v4574_v58  ;;  %v4622_v54 = vld [vmem:[#allocation5 + $0x344] ss:$16 sps:$4 sm:$0xff]  }
 0x218   :  { %v1217_v56 = vadd.f32 %v1216_v38, %v1176_v26  ;;  %v1178_v57 = vadd.f32 %v1177_v55, %v551_v53  ;;  %v4587_v38 = vld [vmem:[#allocation5 + $0x520] ss:$16 sps:$4 sm:$0xff]  }
 0x219   :  { %v1179_v59 = vpop.f32.mrf.mxu1  ;;  %v4614_v53 = vld [vmem:[#allocation5 + $0x360] ss:$16 sps:$4 sm:$0xff]  }
 0x21a   :  { %v1219_v60 = vadd.f32 %v1218_v42, %v1178_v57  ;;  %v1225_v61 = vmax.f32 %v1217_v56, 0.0  ;;  %2786 = vmatpush1.bf16.msra.mxu0 %v4572_v18  ;;  %v4590_v42 = vld [vmem:[#allocation5 + $0x3e0] ss:$16 sps:$4 sm:$0xff]   ;;  %v4628_v56 = vld [vmem:[#allocation5 + $0x324] ss:$16 sps:$4 sm:$0xff]  }
 0x21b   :  { %v1180_v62 = vpop.f32.mrf.mxu1  ;;  %2787 = vmatprep.subr.bf16.mxu0 %v4577_v20  ;;  %v4620_v26 = vld [vmem:[#allocation5 + $0x340] ss:$16 sps:$4 sm:$0xff]   ;;  %v4634_v59 = vld [vmem:[#allocation5 + $0x504] ss:$16 sps:$4 sm:$0xff]  }
 0x21c   :  { %v1226_v33 = vmax.f32 %v1219_v60, 0.0  ;;  %v1229_v2 = vpack.c.bf16 %v1225_v61, %v1225_v61  ;;  %v4626_v55 = vld [vmem:[#allocation5 + $0x320] ss:$16 sps:$4 sm:$0xff]   ;;  %v4640_v61 = vld [vmem:[#allocation5 + $0x4e4] ss:$16 sps:$4 sm:$0xff]  }
 0x21d   :  { %v4632_v57 = vld [vmem:[#allocation5 + $0x500] ss:$16 sps:$4 sm:$0xff]  }
 0x21e   :  { %v1230_v63 = vpack.c.bf16 %v1226_v33, %v1226_v33  ;;  %2788 = vmatpush1.bf16.msra.mxu0 %v4575_v23  ;;  %v4638_v60 = vld [vmem:[#allocation5 + $0x4e0] ss:$16 sps:$4 sm:$0xff]   ;;  %v4646_v33 = vld [vmem:[#allocation5 + $0x4c4] ss:$16 sps:$4 sm:$0xff]  }
 0x21f   :  { %v4644_v62 = vld [vmem:[#allocation5 + $0x4c0] ss:$16 sps:$4 sm:$0xff]  }
 0x220   :  { %1688 = vmatprep.mubr.bf16.mxu1 %v1230_v63  ;;  %v4650_v63 = vld [vmem:[#allocation5 + $0x4a0] ss:$16 sps:$4 sm:$0xff]  }
 0x221   :  { %1689 = vmatmul.mubr.bf16.vlgmr.msra.gmra.mxu1 %v1229_v2  ;;  %v4656_v2 = vld [vmem:[#allocation5 + $0x480] ss:$16 sps:$4 sm:$0xff]  }
 0x222   :  { %2023 = vmatpush1.bf16.msra.mxu1 %v4536_v1  ;;  %3950 = vmatprep.mubr.msk.bf16.mxu1 %vm340_vm0, %v1837_v25  ;;  %v4580_v25 = vld [vmem:[#allocation5 + $0x564] ss:$16 sps:$4 sm:$0xff]  }
 0x223   :  { %2024 = vmatprep.subr.bf16.mxu1 %v4541_v3  ;;  %2789 = vmatprep.subr.bf16.mxu0 %v4580_v25  ;;  %v4652_v1 = vld [vmem:[#allocation5 + $0x4a4] ss:$16 sps:$4 sm:$0xff]  }
 0x224   :  { %2790 = vmatpush1.bf16.msra.mxu0 %v4578_v28  ;;  %v4658_v3 = vld [vmem:[#allocation5 + $0x484] ss:$16 sps:$4 sm:$0xff]  }
 0x225   :  { %2791 = vmatprep.subr.bf16.mxu0 %v4583_v29 }
 0x226   :  { %2025 = vmatpush1.bf16.msra.mxu1 %v4539_v4  ;;  %v4662_v4 = vld [vmem:[#allocation5 + $0x460] ss:$16 sps:$4 sm:$0xff]  }
 0x227   :  { %2026 = vmatprep.subr.bf16.mxu1 %v4544_v0  ;;  %v4664_v0 = vld [vmem:[#allocation5 + $0x464] ss:$16 sps:$4 sm:$0xff]  }
 0x228   :  { %2792 = vmatpush1.bf16.msra.mxu0 %v4581_v31  ;;  %v4599_v31 = vld [vmem:[#allocation5 + $0x408] ss:$16 sps:$4 sm:$0xff]  }
 0x229   :  { %2793 = vmatprep.subr.bf16.mxu0 %v4589_v35  ;;  %v4613_v35 = vld [vmem:[#allocation5 + $0x3cc] ss:$16 sps:$4 sm:$0xff]  }
 0x22a   :  { %2027 = vmatpush1.bf16.msra.mxu1 %v4542_v5  ;;  %v4670_v5 = vld [vmem:[#allocation5 + $0x444] ss:$16 sps:$4 sm:$0xff]  }
 0x22b   :  { %2028 = vmatprep.subr.bf16.mxu1 %v4547_v6  ;;  %v4668_v6 = vld [vmem:[#allocation5 + $0x440] ss:$16 sps:$4 sm:$0xff]  }
 0x22c   :  { %2794 = vmatpush1.bf16.msra.mxu0 %v4587_v38  ;;  %v4611_v38 = vld [vmem:[#allocation5 + $0x3c8] ss:$16 sps:$4 sm:$0xff]  }
 0x22d   :  { %2809 = vmatprep.subr.bf16.mxu0 %v4595_v43 }
 0x22e   :  { %2029 = vmatpush1.bf16.msra.mxu1 %v4545_v10 }
 0x22f   :  { %2030 = vmatprep.subr.bf16.mxu1 %v4550_v12 }
 0x230   :  { %2810 = vmatpush2.bf16.msra.mxu0 %v4593_v44  ;;  %v4625_v44 = vld [vmem:[#allocation5 + $0x38c] ss:$16 sps:$4 sm:$0xff]  }
 0x231   :  { %2820 = vmatprep.subr.bf16.mxu0 %v4601_v47 }
 0x232   :  { %2031 = vmatpush1.bf16.msra.mxu1 %v4548_v14 }
 0x233   :  { %2032 = vmatprep.subr.bf16.mxu1 %v4553_v16 }
 0x236   :  { %2033 = vmatpush1.bf16.msra.mxu1 %v4551_v17  ;;  %v5069_v17 = vld [vmem:[%s5196_s8 + $0x4] sm:$0xf] }
 0x237   :  { %2034 = vmatprep.subr.bf16.mxu1 %v4556_v19  ;;  %v1806_v18 = vrot.slane %v5069_v17, %v5006_v37  ;;  %v1810_v19 = vrot.slane %v5069_v17, %v5015_v40 }
 0x23a   :  { %2035 = vmatpush1.bf16.msra.mxu1 %v4554_v22 }
 0x23b   :  { %2036 = vmatprep.subr.bf16.mxu1 %v4559_v24 }
 0x23e   :  { %2037 = vmatpush1.bf16.msra.mxu1 %v4557_v27 }
 0x23f   :  { %2052 = vmatprep.subr.bf16.mxu1 %v4562_v21 }
 0x242   :  { %2053 = vmatpush2.bf16.msra.mxu1 %v4560_v30 }
 0x243   :  { %2738 = vmatprep.subr.bf16.mxu1 %v4586_v32  ;;  %v4607_v32 = vld [vmem:[#allocation5 + $0x3ec] ss:$16 sps:$4 sm:$0xff]  }
 0x245   :  { %2055 = vmatmul.mubr.bf16.vlgmr.msra.gmra.mxu1 %v5057_v51  ;;  %v4610_v51 = vld [vmem:[#allocation5 + $0x384] ss:$16 sps:$4 sm:$0xff]  }
 0x246   :  { %2739 = vmatpush1.bf16.msra.mxu1 %v4584_v34  ;;  %v4605_v34 = vld [vmem:[#allocation5 + $0x3e8] ss:$16 sps:$4 sm:$0xff]  }
 0x247   :  { %2740 = vmatprep.subr.bf16.mxu1 %v4592_v41  ;;  %v4619_v41 = vld [vmem:[#allocation5 + $0x3ac] ss:$16 sps:$4 sm:$0xff]  }
 0x24a   :  { %2741 = vmatpush1.bf16.msra.mxu1 %v4590_v42  ;;  %v4617_v42 = vld [vmem:[#allocation5 + $0x3a8] ss:$16 sps:$4 sm:$0xff]  }
 0x24b   :  { %2742 = vmatprep.subr.bf16.mxu1 %v4598_v46 }
 0x24e   :  { %2743 = vmatpush1.bf16.msra.mxu1 %v4596_v45 }
 0x24f   :  { %2744 = vmatprep.subr.bf16.mxu1 %v4604_v49  ;;  %v4623_v49 = vld [vmem:[#allocation5 + $0x388] ss:$16 sps:$4 sm:$0xff]  }
 0x252   :  { %2745 = vmatpush1.bf16.msra.mxu1 %v4602_v48 }
 0x253   :  { %2746 = vmatprep.subr.bf16.mxu1 %v4610_v51  ;;  %v4631_v51 = vld [vmem:[#allocation5 + $0x36c] ss:$16 sps:$4 sm:$0xff]  }
 0x256   :  { %2747 = vmatpush1.bf16.msra.mxu1 %v4608_v50 }
 0x257   :  { %2748 = vmatprep.subr.bf16.mxu1 %v4616_v52 }
 0x25a   :  { %2749 = vmatpush1.bf16.msra.mxu1 %v4614_v53 }
 0x25b   :  { %2750 = vmatprep.subr.bf16.mxu1 %v4622_v54  ;;  %v4629_v54 = vld [vmem:[#allocation5 + $0x368] ss:$16 sps:$4 sm:$0xff]  }
 0x25e   :  { %2751 = vmatpush1.bf16.msra.mxu1 %v4620_v26  ;;  %v4637_v26 = vld [vmem:[#allocation5 + $0x34c] ss:$16 sps:$4 sm:$0xff]  }
 0x25f   :  { %2752 = vmatprep.subr.bf16.mxu1 %v4628_v56  ;;  %v4643_v56 = vld [vmem:[#allocation5 + $0x32c] ss:$16 sps:$4 sm:$0xff]  }
 0x262   :  { %2753 = vmatpush1.bf16.msra.mxu1 %v4626_v55  ;;  %v4635_v55 = vld [vmem:[#allocation5 + $0x348] ss:$16 sps:$4 sm:$0xff]  }
 0x263   :  { %2754 = vmatprep.subr.bf16.mxu1 %v4634_v59  ;;  %v4649_v59 = vld [vmem:[#allocation5 + $0x50c] ss:$16 sps:$4 sm:$0xff]  }
 0x266   :  { %2755 = vmatpush2.bf16.msra.mxu1 %v4632_v57  ;;  %v4641_v57 = vld [vmem:[#allocation5 + $0x328] ss:$16 sps:$4 sm:$0xff]  }
 0x267   :  { %2756 = vmatprep.subr.bf16.mxu1 %v4640_v61  ;;  %v4655_v61 = vld [vmem:[#allocation5 + $0x4ec] ss:$16 sps:$4 sm:$0xff]  }
 0x26a   :  { %2757 = vmatpush2.bf16.msra.mxu1 %v4638_v60  ;;  %v4647_v60 = vld [vmem:[#allocation5 + $0x508] ss:$16 sps:$4 sm:$0xff]  }
 0x26b   :  { %2758 = vmatprep.subr.bf16.mxu1 %v4646_v33  ;;  %v4661_v33 = vld [vmem:[#allocation5 + $0x4cc] ss:$16 sps:$4 sm:$0xff]  }
 0x26e   :  { %2759 = vmatpush2.bf16.msra.mxu1 %v4644_v62  ;;  %v4653_v62 = vld [vmem:[#allocation5 + $0x4e8] ss:$16 sps:$4 sm:$0xff]  }
 0x26f   :  { %2760 = vmatprep.subr.bf16.mxu1 %v4652_v1  ;;  %v4667_v1 = vld [vmem:[#allocation5 + $0x4ac] ss:$16 sps:$4 sm:$0xff]  }
 0x272   :  { %2761 = vmatpush2.bf16.msra.mxu1 %v4650_v63  ;;  %v4659_v63 = vld [vmem:[#allocation5 + $0x4c8] ss:$16 sps:$4 sm:$0xff]  }
 0x273   :  { %2762 = vmatprep.subr.bf16.mxu1 %v4658_v3  ;;  %v4673_v3 = vld [vmem:[#allocation5 + $0x48c] ss:$16 sps:$4 sm:$0xff]  }
 0x276   :  { %2763 = vmatpush2.bf16.msra.mxu1 %v4656_v2  ;;  %v4665_v2 = vld [vmem:[#allocation5 + $0x4a8] ss:$16 sps:$4 sm:$0xff]  }
 0x277   :  { %2764 = vmatprep.subr.bf16.mxu1 %v4664_v0  ;;  %v1802_v0 = vrot.slane %v5069_v17, %v5012_v39 }
 0x27a   :  { %2765 = vmatpush2.bf16.msra.mxu1 %v4662_v4  ;;  %v1798_v4 = vrot.slane %v5069_v17, %v5003_v36 }
 0x27b   :  { %2766 = vmatprep.subr.bf16.mxu1 %v4670_v5  ;;  %v4671_v5 = vld [vmem:[#allocation5 + $0x488] ss:$16 sps:$4 sm:$0xff]  }
 0x27e   :  { %2767 = vmatpush2.bf16.msra.mxu1 %v4668_v6 }
 0x27f   :  { %2768 = vmatprep.subr.bf16.mxu1 %v4676_v7  ;;  %v4679_v7 = vld [vmem:[#allocation5 + $0x46c] ss:$16 sps:$4 sm:$0xff]  }
 0x282   :  { %2769 = vmatpush2.bf16.msra.mxu1 %v4674_v8 }
 0x283   :  { %2861 = vmatprep.subr.bf16.mxu1 %v4682_v9 }
 0x2a1   :  { %v1649_v10 = vpop.f32.mrf.mxu0 }
 0x2a3   :  { %v1651_v11 = vpop.f32.mrf.mxu0 }
 0x2a5   :  { %v1653_v12 = vpop.f32.mrf.mxu0 }
 0x2a7   :  { %v1654_v13 = vpop.f32.mrf.mxu0 }
 0x2a9   :  { %v1747_v14 = vpop.f32.mrf.mxu0 }
 0x2ab   :  { %v1749_v15 = vpop.f32.mrf.mxu0 }
 0x2ad   :  { %v1751_v16 = vpop.f32.mrf.mxu0 }
 0x2af   :  { %v1752_v58 = vpop.f32.mrf.mxu0 }
 0x2cd   :  { %v2097_v20 = vpop.f32.mrf.mxu0 }
 0x2ce   :  { %v2098_v22 = vadd.f32 %v2097_v20, %v1806_v18  ;;  %v4680_v18 = vld [vmem:[#allocation5 + $0x608] ss:$16 sps:$4 sm:$0xff]   ;;  %v4688_v20 = vld [vmem:[#allocation5 + $0x5ec] ss:$16 sps:$4 sm:$0xff]  }
 0x2cf   :  { %v2099_v23 = vpop.f32.mrf.mxu0 }
 0x2d0   :  { %v2106_v24 = vmax.f32 %v2098_v22, 0.0  ;;  %v2100_v25 = vadd.f32 %v2099_v23, %v1810_v19  ;;  %v4683_v19 = vld [vmem:[#allocation5 + $0x448] ss:$16 sps:$4 sm:$0xff]   ;;  %v4691_v22 = vld [vmem:[#allocation5 + $0x42c] ss:$16 sps:$4 sm:$0xff]  }
 0x2d1   :  { %v2101_v27 = vpop.f32.mrf.mxu0  ;;  %v4686_v23 = vld [vmem:[#allocation5 + $0x5e8] ss:$16 sps:$4 sm:$0xff]  }
 0x2d2   :  { %v2107_v28 = vmax.f32 %v2100_v25, 0.0  ;;  %v5075_v21 = vpack.c.bf16 %v2106_v24, %v2106_v24  ;;  %v4689_v24 = vld [vmem:[#allocation5 + $0x428] ss:$16 sps:$4 sm:$0xff]   ;;  %v4694_v25 = vld [vmem:[#allocation5 + $0x5cc] ss:$16 sps:$4 sm:$0xff]  }
 0x2d3   :  { %v2102_v29 = vpop.f32.mrf.mxu0  ;;  %v4692_v27 = vld [vmem:[#allocation5 + $0x5c8] ss:$16 sps:$4 sm:$0xff]  }
 0x2d4   :  { %v5077_v30 = vpack.c.bf16 %v2107_v28, %v2107_v28  ;;  %v4697_v28 = vld [vmem:[#allocation5 + $0x5ac] ss:$16 sps:$4 sm:$0xff]   ;;  %v4695_v29 = vld [vmem:[#allocation5 + $0x5a8] ss:$16 sps:$4 sm:$0xff]  }
 0x2d6   :  { %4052 = vmatprep.mubr.msk.bf16.mxu0 %vm340_vm0, %v5077_v30 }
 0x2d7   :  { %2812 = vmatmul.mubr.bf16.vlgmr.msra.gmra.mxu0 %v5075_v21 }
 0x2d8   :  { %2821 = vmatpush1.bf16.msra.mxu0 %v4599_v31  ;;  %v4700_v31 = vld [vmem:[#allocation5 + $0x58c] ss:$16 sps:$4 sm:$0xff]  }
 0x2d9   :  { %2822 = vmatprep.subr.bf16.mxu0 %v4607_v32  ;;  %v4698_v32 = vld [vmem:[#allocation5 + $0x588] ss:$16 sps:$4 sm:$0xff]  }
 0x2dc   :  { %2823 = vmatpush1.bf16.msra.mxu0 %v4605_v34  ;;  %v4703_v34 = vld [vmem:[#allocation5 + $0x56c] ss:$16 sps:$4 sm:$0xff]  }
 0x2dd   :  { %2824 = vmatprep.subr.bf16.mxu0 %v4613_v35  ;;  %v4740_v35 = vld [vmem:[#allocation7 + $0x370] ss:$8 sps:$4 sm:$0xff]  }
 0x2e0   :  { %2825 = vmatpush1.bf16.msra.mxu0 %v4611_v38  ;;  %v4742_v38 = vld [vmem:[#allocation7 + $0x374] ss:$8 sps:$4 sm:$0xff]  }
 0x2e1   :  { %v1690_v43 = vpop.f32.mrf.mxu1  ;;  %2826 = vmatprep.subr.bf16.mxu0 %v4619_v41  ;;  %v4706_v41 = vld [vmem:[#allocation5 + $0x54c] ss:$16 sps:$4 sm:$0xff]  }
 0x2e2   :  { %v1691_v45 = vadd.f32 %v1690_v43, %v1649_v10  ;;  %v4746_v43 = vld [vmem:[#allocation7 + $0x360] ss:$8 sps:$4 sm:$0xff]  }
 0x2e3   :  { %v1692_v46 = vpop.f32.mrf.mxu1 }
 0x2e4   :  { %v5082_v47 = vadd.f32 %v1747_v14, %v1691_v45  ;;  %v1693_v48 = vadd.f32 %v1692_v46, %v1651_v11  ;;  %2827 = vmatpush1.bf16.msra.mxu0 %v4617_v42  ;;  %v4677_v11 = vld [vmem:[#allocation5 + $0x468] ss:$16 sps:$4 sm:$0xff]   ;;  %v4685_v14 = vld [vmem:[#allocation5 + $0x44c] ss:$16 sps:$4 sm:$0xff]  }
 0x2e5   :  { %v1694_v50 = vpop.f32.mrf.mxu1  ;;  %2828 = vmatprep.subr.bf16.mxu0 %v4625_v44  ;;  %v4748_v42 = vld [vmem:[#allocation7 + $0x364] ss:$8 sps:$4 sm:$0xff]   ;;  %v4704_v44 = vld [vmem:[#allocation5 + $0x548] ss:$16 sps:$4 sm:$0xff]   ;;  %v4754_v45 = vld [vmem:[#allocation7 + $0x354] ss:$8 sps:$4 sm:$0xff]  }
 0x2e6   :  { %v5084_v52 = vadd.f32 %v1749_v15, %v1693_v48  ;;  %v4709_v46 = vld [vmem:[#allocation5 + $0x52c] ss:$16 sps:$4 sm:$0xff]   ;;  %v4752_v48 = vld [vmem:[#allocation7 + $0x350] ss:$8 sps:$4 sm:$0xff]  }
 0x2e7   :  { %v1695_v53 = vpop.f32.mrf.mxu1  ;;  %v4760_v50 = vld [vmem:[#allocation7 + $0x344] ss:$8 sps:$4 sm:$0xff]  }
 0x2e8   :  { %2829 = vmatpush1.bf16.msra.mxu0 %v4623_v49  ;;  %v4707_v49 = vld [vmem:[#allocation5 + $0x528] ss:$16 sps:$4 sm:$0xff]  }
 0x2e9   :  { %2830 = vmatprep.subr.bf16.mxu0 %v4631_v51  ;;  %v4712_v51 = vld [vmem:[#allocation5 + $0x62c] ss:$16 sps:$4 sm:$0xff]   ;;  %v4758_v53 = vld [vmem:[#allocation7 + $0x340] ss:$8 sps:$4 sm:$0xff]  }
 0x2ec   :  { %2831 = vmatpush1.bf16.msra.mxu0 %v4629_v54  ;;  %v4710_v54 = vld [vmem:[#allocation5 + $0x628] ss:$16 sps:$4 sm:$0xff]  }
 0x2ed   :  { %2832 = vmatprep.subr.bf16.mxu0 %v4637_v26  ;;  %v4766_v26 = vld [vmem:[#allocation7 + $0x334] ss:$8 sps:$4 sm:$0xff]  }
 0x2f0   :  { %2833 = vmatpush1.bf16.msra.mxu0 %v4635_v55  ;;  %v4715_v55 = vld [vmem:[#allocation7 + $0x274] ss:$8 sps:$4 sm:$0xff]  }
 0x2f1   :  { %2834 = vmatprep.subr.bf16.mxu0 %v4643_v56  ;;  %v4764_v56 = vld [vmem:[#allocation7 + $0x330] ss:$8 sps:$4 sm:$0xff]  }
 0x2f4   :  { %2835 = vmatpush1.bf16.msra.mxu0 %v4641_v57  ;;  %v4713_v57 = vld [vmem:[#allocation7 + $0x270] ss:$8 sps:$4 sm:$0xff]  }
 0x2f5   :  { %2836 = vmatprep.subr.bf16.mxu0 %v4649_v59  ;;  %v4718_v59 = vld [vmem:[#allocation7 + $0x264] ss:$8 sps:$4 sm:$0xff]  }
 0x2f8   :  { %2837 = vmatpush2.bf16.msra.mxu0 %v4647_v60  ;;  %v4716_v60 = vld [vmem:[#allocation7 + $0x260] ss:$8 sps:$4 sm:$0xff]  }
 0x2f9   :  { %2838 = vmatprep.subr.bf16.mxu0 %v4655_v61  ;;  %v4721_v61 = vld [vmem:[#allocation7 + $0x254] ss:$8 sps:$4 sm:$0xff]  }
 0x2fc   :  { %2839 = vmatpush2.bf16.msra.mxu0 %v4653_v62  ;;  %v4719_v62 = vld [vmem:[#allocation7 + $0x250] ss:$8 sps:$4 sm:$0xff]  }
 0x2fd   :  { %2840 = vmatprep.subr.bf16.mxu0 %v4661_v33  ;;  %v4724_v33 = vld [vmem:[#allocation7 + $0x244] ss:$8 sps:$4 sm:$0xff]  }
 0x300   :  { %2841 = vmatpush2.bf16.msra.mxu0 %v4659_v63  ;;  %v4722_v63 = vld [vmem:[#allocation7 + $0x240] ss:$8 sps:$4 sm:$0xff]  }
 0x301   :  { %2842 = vmatprep.subr.bf16.mxu0 %v4667_v1  ;;  %v4727_v1 = vld [vmem:[#allocation7 + $0x234] ss:$8 sps:$4 sm:$0xff]  }
 0x304   :  { %2843 = vmatpush2.bf16.msra.mxu0 %v4665_v2  ;;  %v4725_v2 = vld [vmem:[#allocation7 + $0x230] ss:$8 sps:$4 sm:$0xff]  }
 0x305   :  { %v2056_v6 = vpop.f32.mrf.mxu1  ;;  %2844 = vmatprep.subr.bf16.mxu0 %v4673_v3  ;;  %v4730_v3 = vld [vmem:[#allocation7 + $0x224] ss:$8 sps:$4 sm:$0xff]  }
 0x306   :  { %v2057_v8 = vadd.f32 %v2056_v6, %v1798_v4  ;;  %v4728_v4 = vld [vmem:[#allocation7 + $0x220] ss:$8 sps:$4 sm:$0xff]  }
 0x307   :  { %v2058_v9 = vpop.f32.mrf.mxu1  ;;  %v4734_v6 = vld [vmem:[#allocation7 + $0x200] ss:$8 sps:$4 sm:$0xff]  }
 0x308   :  { %v2059_v10 = vadd.f32 %v2058_v9, %v1802_v0  ;;  %2845 = vmatpush2.bf16.msra.mxu0 %v4671_v5  ;;  %v2104_v12 = vmax.f32 %v2057_v8, 0.0  ;;  %v4731_v0 = vld [vmem:[#allocation7 + $0x210] ss:$8 sps:$4 sm:$0xff]   ;;  %v4736_v5 = vld [vmem:[#allocation7 + $0x204] ss:$8 sps:$4 sm:$0xff]  }
 0x309   :  { %v2060_v13 = vpop.f32.mrf.mxu1  ;;  %2846 = vmatprep.subr.bf16.mxu0 %v4679_v7  ;;  %v4739_v7 = vld [vmem:[#allocation7 + $0x2f4] ss:$8 sps:$4 sm:$0xff]   ;;  %v4772_v8 = vld [vmem:[#allocation7 + $0x324] ss:$8 sps:$4 sm:$0xff]   ;;  %v4737_v9 = vld [vmem:[#allocation7 + $0x2f0] ss:$8 sps:$4 sm:$0xff]  }
 0x30a   :  { %v2105_v15 = vmax.f32 %v2059_v10, 0.0  ;;  %v2108_v17 = vpack.c.bf16 %v2104_v12, %v2104_v12  ;;  %v4770_v10 = vld [vmem:[#allocation7 + $0x320] ss:$8 sps:$4 sm:$0xff]   ;;  %v4778_v12 = vld [vmem:[#allocation7 + $0x314] ss:$8 sps:$4 sm:$0xff]  }
 0x30b   :  { %v2061_v16 = vpop.f32.mrf.mxu1  ;;  %v4743_v13 = vld [vmem:[#allocation7 + $0x2e0] ss:$8 sps:$4 sm:$0xff]  }
 0x30c   :  { %v2109_v58 = vpack.c.bf16 %v2105_v15, %v2105_v15  ;;  %2847 = vmatpush2.bf16.msra.mxu0 %v4677_v11  ;;  %v4745_v11 = vld [vmem:[#allocation7 + $0x2e4] ss:$8 sps:$4 sm:$0xff]   ;;  %v4751_v15 = vld [vmem:[#allocation7 + $0x2d4] ss:$8 sps:$4 sm:$0xff]  }
 0x30d   :  { %2848 = vmatprep.subr.bf16.mxu0 %v4685_v14  ;;  %v4776_v14 = vld [vmem:[#allocation7 + $0x310] ss:$8 sps:$4 sm:$0xff]   ;;  %v4784_v16 = vld [vmem:[#allocation7 + $0x304] ss:$8 sps:$4 sm:$0xff]  }
 0x30e   :  { %2770 = vmatprep.mubr.bf16.mxu1 %v2109_v58  ;;  %2852 = vmatprep.mubr.bf16.mxu0 %v2109_v58  ;;  %v4749_v58 = vld [vmem:[#allocation7 + $0x2d0] ss:$8 sps:$4 sm:$0xff]  }
 0x30f   :  { %2771 = vmatmul.mubr.bf16.vlgmr.msra.gmra.mxu1 %v2108_v17 }
 0x310   :  { %2862 = vmatpush1.bf16.msra.mxu1 %v4680_v18  ;;  %2849 = vmatpush2.bf16.msra.mxu0 %v4683_v19  ;;  %v4782_v18 = vld [vmem:[#allocation7 + $0x300] ss:$8 sps:$4 sm:$0xff]   ;;  %v4757_v19 = vld [vmem:[#allocation7 + $0x2c4] ss:$8 sps:$4 sm:$0xff]  }
 0x311   :  { %4053 = vmatprep.mubr.msk.bf16.mxu1 %vm340_vm0, %v5077_v30  ;;  %2863 = vmatprep.subr.bf16.mxu1 %v4688_v20  ;;  %v4701_v30 = vld [vmem:[#allocation5 + $0x568] ss:$16 sps:$4 sm:$0xff]   ;;  %v4787_v20 = vld [vmem:[#allocation7 + $0x3f4] ss:$8 sps:$4 sm:$0xff]  }
 0x312   :  { %2850 = vmatprep.subr.bf16.mxu0 %v4691_v22  ;;  %v4755_v22 = vld [vmem:[#allocation7 + $0x2c0] ss:$8 sps:$4 sm:$0xff]  }
 0x314   :  { %2864 = vmatpush1.bf16.msra.mxu1 %v4686_v23  ;;  %2851 = vmatpush2.bf16.msra.mxu0 %v4689_v24  ;;  %v4763_v23 = vld [vmem:[#allocation7 + $0x2b4] ss:$8 sps:$4 sm:$0xff]   ;;  %v4790_v24 = vld [vmem:[#allocation7 + $0x3e4] ss:$8 sps:$4 sm:$0xff]  }
 0x315   :  { %2865 = vmatprep.subr.bf16.mxu1 %v4694_v25  ;;  %3336 = vmatprep.subr.bf16.mxu0 %v4742_v38  ;;  %v4788_v25 = vld [vmem:[#allocation7 + $0x3e0] ss:$8 sps:$4 sm:$0xff]   ;;  %v4799_v38 = vld [vmem:[#allocation7 + $0x3b4] ss:$8 sps:$4 sm:$0xff]  }
 0x317   :  { %2853 = vmatmul.mubr.bf16.vlgmr.msra.gmra.mxu0 %v2108_v17  ;;  %v4785_v17 = vld [vmem:[#allocation7 + $0x3f0] ss:$8 sps:$4 sm:$0xff]  }
 0x318   :  { %2866 = vmatpush1.bf16.msra.mxu1 %v4692_v27  ;;  %3337 = vmatpush1.bf16.msra.mxu0 %v4740_v35  ;;  %v4793_v27 = vld [vmem:[#allocation7 + $0x3d4] ss:$8 sps:$4 sm:$0xff]  }
 0x319   :  { %2867 = vmatprep.subr.bf16.mxu1 %v4697_v28  ;;  %3338 = vmatprep.subr.bf16.mxu0 %v4748_v42  ;;  %v4761_v28 = vld [vmem:[#allocation7 + $0x2b0] ss:$8 sps:$4 sm:$0xff]   ;;  %v4775_v35 = vld [vmem:[#allocation7 + $0x294] ss:$8 sps:$4 sm:$0xff]   ;;  %v4781_v42 = vld [vmem:[#allocation7 + $0x284] ss:$8 sps:$4 sm:$0xff]  }
 0x31c   :  { %2868 = vmatpush1.bf16.msra.mxu1 %v4695_v29  ;;  %3339 = vmatpush1.bf16.msra.mxu0 %v4746_v43  ;;  %v4769_v29 = vld [vmem:[#allocation7 + $0x2a4] ss:$8 sps:$4 sm:$0xff]   ;;  %v4797_v43 = vld [vmem:[#allocation7 + $0x3b0] ss:$8 sps:$4 sm:$0xff]  }
 0x31d   :  { %2869 = vmatprep.subr.bf16.mxu1 %v4700_v31  ;;  %3340 = vmatprep.subr.bf16.mxu0 %v4754_v45  ;;  %v4791_v31 = vld [vmem:[#allocation7 + $0x3d0] ss:$8 sps:$4 sm:$0xff]   ;;  %v4779_v45 = vld [vmem:[#allocation7 + $0x280] ss:$8 sps:$4 sm:$0xff]  }
 0x320   :  { %2870 = vmatpush1.bf16.msra.mxu1 %v4698_v32  ;;  %3341 = vmatpush1.bf16.msra.mxu0 %v4752_v48  ;;  %v4796_v32 = vld [vmem:[#allocation7 + $0x3c4] ss:$8 sps:$4 sm:$0xff]   ;;  %v4805_v48 = vld [vmem:[#allocation7 + $0x394] ss:$8 sps:$4 sm:$0xff]  }
 0x321   :  { %2871 = vmatprep.subr.bf16.mxu1 %v4703_v34  ;;  %3342 = vmatprep.subr.bf16.mxu0 %v4760_v50  ;;  %v4767_v34 = vld [vmem:[#allocation7 + $0x2a0] ss:$8 sps:$4 sm:$0xff]   ;;  %v4808_v50 = vld [vmem:[#allocation7 + $0x384] ss:$8 sps:$4 sm:$0xff]  }
 0x324   :  { %2872 = vmatpush1.bf16.msra.mxu1 %v4701_v30  ;;  %3343 = vmatpush1.bf16.msra.mxu0 %v4758_v53  ;;  %v4794_v30 = vld [vmem:[#allocation7 + $0x3c0] ss:$8 sps:$4 sm:$0xff]  }
 0x325   :  { %2873 = vmatprep.subr.bf16.mxu1 %v4706_v41  ;;  %3344 = vmatprep.subr.bf16.mxu0 %v4766_v26  ;;  %v4773_v41 = vld [vmem:[#allocation7 + $0x290] ss:$8 sps:$4 sm:$0xff]  }
 0x328   :  { %2874 = vmatpush1.bf16.msra.mxu1 %v4704_v44  ;;  %3345 = vmatpush1.bf16.msra.mxu0 %v4764_v56  ;;  %v4802_v44 = vld [vmem:[#allocation7 + $0x3a4] ss:$8 sps:$4 sm:$0xff]  }
 0x329   :  { %2875 = vmatprep.subr.bf16.mxu1 %v4709_v46  ;;  %3346 = vmatprep.subr.bf16.mxu0 %v4772_v8  ;;  %v4800_v46 = vld [vmem:[#allocation7 + $0x3a0] ss:$8 sps:$4 sm:$0xff]   ;;  %v2213_v56 = vld [vmem:[%s5196_s8 + $0xc] sm:$0xf] }
 0x32c   :  { %2876 = vmatpush1.bf16.msra.mxu1 %v4707_v49  ;;  %3347 = vmatpush1.bf16.msra.mxu0 %v4770_v10  ;;  %v4803_v49 = vld [vmem:[#allocation7 + $0x390] ss:$8 sps:$4 sm:$0xff]   ;;  %v2226_v10 = vrot.slane %v2213_v56, %v5006_v37 }
 0x32d   :  { %2891 = vmatprep.subr.bf16.mxu1 %v4712_v51  ;;  %3348 = vmatprep.subr.bf16.mxu0 %v4778_v12  ;;  %v4806_v51 = vld [vmem:[#allocation7 + $0x380] ss:$8 sps:$4 sm:$0xff]   ;;  %v4809_v37 = vld [vmem:[%s5194_s6 + $0x78] sm:$0xff]  }
 0x330   :  { %2892 = vmatpush2.bf16.msra.mxu1 %v4710_v54  ;;  %3349 = vmatpush1.bf16.msra.mxu0 %v4776_v14 }
 0x331   :  { %3295 = vmatprep.subr.bf16.mxu1 %v4715_v55  ;;  %3350 = vmatprep.subr.bf16.mxu0 %v4784_v16 }
 0x333   :  { %2894 = vmatmul.mubr.bf16.vlgmr.msra.gmra.mxu1 %v5075_v21  ;;  %v4733_v21 = vld [vmem:[#allocation7 + $0x214] ss:$8 sps:$4 sm:$0xff]  }
 0x334   :  { %3296 = vmatpush1.bf16.msra.mxu1 %v4713_v57  ;;  %3351 = vmatpush1.bf16.msra.mxu0 %v4782_v18  ;;  %v2218_v57 = vrot.slane %v2213_v56, %v5003_v36 }
 0x335   :  { %3297 = vmatprep.subr.bf16.mxu1 %v4718_v59  ;;  %3352 = vmatprep.subr.bf16.mxu0 %v4787_v20  ;;  %v2222_v59 = vrot.slane %v2213_v56, %v5012_v39 }
 0x338   :  { %3298 = vmatpush1.bf16.msra.mxu1 %v4716_v60  ;;  %3353 = vmatpush2.bf16.msra.mxu0 %v4785_v17 }
 0x339   :  { %3299 = vmatprep.subr.bf16.mxu1 %v4721_v61  ;;  %3354 = vmatprep.subr.bf16.mxu0 %v4790_v24  ;;  %v4811_v24 = vld [vmem:[%s5194_s6 + $0x70] sm:$0xff]  }
 0x33c   :  { %3300 = vmatpush1.bf16.msra.mxu1 %v4719_v62  ;;  %3355 = vmatpush2.bf16.msra.mxu0 %v4788_v25  ;;  %v4812_v25 = vld [vmem:[%s5194_s6 + $0x30] sm:$0xff]  }
 0x33d   :  { %3301 = vmatprep.subr.bf16.mxu1 %v4724_v33  ;;  %3356 = vmatprep.subr.bf16.mxu0 %v4793_v27  ;;  %v4813_v27 = vld [vmem:[%s5194_s6 + $0x68] sm:$0xff]  }
 0x340   :  { %3302 = vmatpush1.bf16.msra.mxu1 %v4722_v63  ;;  %3357 = vmatpush2.bf16.msra.mxu0 %v4791_v31  ;;  %v4816_v31 = vld [vmem:[%s5194_s6 + $0x20] sm:$0xff]  }
 0x341   :  { %3303 = vmatprep.subr.bf16.mxu1 %v4727_v1  ;;  %3358 = vmatprep.subr.bf16.mxu0 %v4796_v32  ;;  %v4817_v32 = vld [vmem:[%s5194_s6 + $0x58] sm:$0xff]  }
 0x344   :  { %3304 = vmatpush1.bf16.msra.mxu1 %v4725_v2  ;;  %3359 = vmatpush2.bf16.msra.mxu0 %v4794_v30  ;;  %v4820_v30 = vld [vmem:[%s5194_s6 + $0x10] sm:$0xff]  }
 0x345   :  { %3305 = vmatprep.subr.bf16.mxu1 %v4730_v3  ;;  %3360 = vmatprep.subr.bf16.mxu0 %v4799_v38  ;;  %v4821_v38 = vld [vmem:[%s5194_s6 + $0x48] sm:$0xff]  }
 0x348   :  { %3306 = vmatpush1.bf16.msra.mxu1 %v4728_v4  ;;  %3361 = vmatpush2.bf16.msra.mxu0 %v4797_v43  ;;  %v4824_v43 = vld [vmem:[%s5194_s6] sm:$0xff]  }
 0x349   :  { %3307 = vmatprep.subr.bf16.mxu1 %v4733_v21  ;;  %3362 = vmatprep.subr.bf16.mxu0 %v4802_v44  ;;  %v4825_v44 = vld [vmem:[%s5195_s7 + $0x38] sm:$0xff]  }
 0x34c   :  { %3308 = vmatpush1.bf16.msra.mxu1 %v4731_v0  ;;  %3363 = vmatpush2.bf16.msra.mxu0 %v4800_v46  ;;  %v4826_v46 = vld [vmem:[%s5195_s7 + $0x30] sm:$0xff]  }
 0x34d   :  { %3309 = vmatprep.subr.bf16.mxu1 %v4736_v5  ;;  %3364 = vmatprep.subr.bf16.mxu0 %v4805_v48  ;;  %v4827_v48 = vld [vmem:[%s5195_s7 + $0x28] sm:$0xff]  }
 0x350   :  { %3310 = vmatpush1.bf16.msra.mxu1 %v4734_v6  ;;  %3365 = vmatpush2.bf16.msra.mxu0 %v4803_v49  ;;  %v4828_v49 = vld [vmem:[%s5195_s7 + $0x20] sm:$0xff]  }
 0x351   :  { %3311 = vmatprep.subr.bf16.mxu1 %v4739_v7  ;;  %3366 = vmatprep.subr.bf16.mxu0 %v4808_v50  ;;  %v4829_v50 = vld [vmem:[%s5195_s7 + $0x18] sm:$0xff]  }
 0x354   :  { %3312 = vmatpush2.bf16.msra.mxu1 %v4737_v9  ;;  %3367 = vmatpush2.bf16.msra.mxu0 %v4806_v51 }
 0x355   :  { %3313 = vmatprep.subr.bf16.mxu1 %v4745_v11  ;;  %v2230_v11 = vrot.slane %v2213_v56, %v5015_v40  ;;  %v4810_v40 = vld [vmem:[%s5194_s6 + $0x38] sm:$0xff]  }
 0x358   :  { %3314 = vmatpush2.bf16.msra.mxu1 %v4743_v13 }
 0x359   :  { %3315 = vmatprep.subr.bf16.mxu1 %v4751_v15 }
 0x35c   :  { %3316 = vmatpush2.bf16.msra.mxu1 %v4749_v58 }
 0x35d   :  { %3317 = vmatprep.subr.bf16.mxu1 %v4757_v19 }
 0x360   :  { %3318 = vmatpush2.bf16.msra.mxu1 %v4755_v22 }
 0x361   :  { %3319 = vmatprep.subr.bf16.mxu1 %v4763_v23 }
 0x364   :  { %3320 = vmatpush2.bf16.msra.mxu1 %v4761_v28  ;;  %v4814_v28 = vld [vmem:[%s5194_s6 + $0x28] sm:$0xff]  }
 0x365   :  { %3321 = vmatprep.subr.bf16.mxu1 %v4769_v29  ;;  %v4815_v29 = vld [vmem:[%s5194_s6 + $0x60] sm:$0xff]  }
 0x368   :  { %3322 = vmatpush2.bf16.msra.mxu1 %v4767_v34  ;;  %v4818_v34 = vld [vmem:[%s5194_s6 + $0x18] sm:$0xff]  }
 0x369   :  { %3323 = vmatprep.subr.bf16.mxu1 %v4775_v35  ;;  %v4819_v35 = vld [vmem:[%s5194_s6 + $0x50] sm:$0xff]  }
 0x36c   :  { %3324 = vmatpush2.bf16.msra.mxu1 %v4773_v41  ;;  %v4822_v41 = vld [vmem:[%s5194_s6 + $0x8] sm:$0xff]  }
 0x36d   :  { %3325 = vmatprep.subr.bf16.mxu1 %v4781_v42  ;;  %v4823_v42 = vld [vmem:[%s5194_s6 + $0x40] sm:$0xff]  }
 0x370   :  { %3326 = vmatpush2.bf16.msra.mxu1 %v4779_v45  ;;  %v4928_v45 = vmov 0.0  }
 0x371   :  { %4144 = vmatprep.subr.bf16.mxu1 %v4809_v37  ;;  %4175 = vmatprep.subr.bf16.mxu0 %v4928_v45 }
 0x397   :  { %v2813_v53 = vpop.f32.mrf.mxu0 }
 0x399   :  { %v2815_v54 = vpop.f32.mrf.mxu0 }
 0x39b   :  { %v2817_v26 = vpop.f32.mrf.mxu0 }
 0x39d   :  { %v2818_v55 = vpop.f32.mrf.mxu0 }
 0x39e   :  { %v3379_v55 = vld [vmem:[%s5196_s8 + $0x10] sm:$0x3] }
 0x3cf   :  { %v2772_v60 = vpop.f32.mrf.mxu1 }
 0x3d0   :  { %v2773_v61 = vadd.f32 %v2772_v60, %v2218_v57 }
 0x3d1   :  { %v2774_v62 = vpop.f32.mrf.mxu1 }
 0x3d2   :  { %v2814_v33 = vadd.f32 %v2813_v53, %v2773_v61  ;;  %v2775_v63 = vadd.f32 %v2774_v62, %v2222_v59  ;;  %v3384_v59 = vrot.slane %v3379_v55, %v5003_v36  ;;  %v4830_v36 = vld [vmem:[%s5195_s7 + $0x10] sm:$0xff]  }
 0x3d3   :  { %v2776_v1 = vpop.f32.mrf.mxu1 }
 0x3d4   :  { %v2816_v2 = vadd.f32 %v2815_v54, %v2775_v63  ;;  %v2902_v3 = vmax.f32 %v2814_v33, 0.0  ;;  %v3388_v33 = vrot.slane %v3379_v55, %v5012_v39  ;;  %v4831_v39 = vld [vmem:[%s5195_s7 + $0x8] sm:$0xff]  }
 0x3d5   :  { %v2777_v4 = vpop.f32.mrf.mxu1 }
 0x3d6   :  { %v2903_v21 = vmax.f32 %v2816_v2, 0.0  ;;  %v2906_v6 = vpack.c.bf16 %v2902_v3, %v2902_v3 }
 0x3d7   :  { %v2854_v0 = vpop.f32.mrf.mxu0 }
 0x3d8   :  { %v2907_v5 = vpack.c.bf16 %v2903_v21, %v2903_v21  ;;  %v2855_v12 = vadd.f32 %v2854_v0, %v2226_v10 }
 0x3d9   :  { %v2856_v7 = vpop.f32.mrf.mxu0 }
 0x3da   :  { %3327 = vmatprep.mubr.bf16.mxu1 %v2907_v5  ;;  %v2857_v14 = vadd.f32 %v2856_v7, %v2230_v11  ;;  %v4118_v7 = vld [vmem:[%s5196_s8 + $0x12] ss:$0 sm:$0xff] }
 0x3db   :  { %v2858_v8 = vpop.f32.mrf.mxu0  ;;  %3328 = vmatmul.mubr.bf16.vlgmr.msra.gmra.mxu1 %v2906_v6 }
 0x3dc   :  { %4145 = vmatpush3.bf16.msra.mxu1 %v4810_v40 }
 0x3dd   :  { %v2859_v9 = vpop.f32.mrf.mxu0  ;;  %4146 = vmatprep.subr.bf16.mxu1 %v4811_v24 }
 0x3e0   :  { %4147 = vmatpush3.bf16.msra.mxu1 %v4812_v25 }
 0x3e1   :  { %4148 = vmatprep.subr.bf16.mxu1 %v4813_v27 }
 0x3e4   :  { %4149 = vmatpush3.bf16.msra.mxu1 %v4814_v28 }
 0x3e5   :  { %4150 = vmatprep.subr.bf16.mxu1 %v4815_v29 }
 0x3e8   :  { %4151 = vmatpush3.bf16.msra.mxu1 %v4816_v31 }
 0x3e9   :  { %4152 = vmatprep.subr.bf16.mxu1 %v4817_v32 }
 0x3ec   :  { %4153 = vmatpush3.bf16.msra.mxu1 %v4818_v34 }
 0x3ed   :  { %4154 = vmatprep.subr.bf16.mxu1 %v4819_v35 }
 0x3f0   :  { %4155 = vmatpush3.bf16.msra.mxu1 %v4820_v30 }
 0x3f1   :  { %4156 = vmatprep.subr.bf16.mxu1 %v4821_v38 }
 0x3f3   :  { %v2895_v13 = vpop.f32.mrf.mxu1 }
 0x3f4   :  { %v2896_v15 = vadd.f32 %v2895_v13, %v2855_v12  ;;  %4157 = vmatpush3.bf16.msra.mxu1 %v4822_v41 }
 0x3f5   :  { %v2897_v16 = vpop.f32.mrf.mxu1  ;;  %4158 = vmatprep.subr.bf16.mxu1 %v4823_v42 }
 0x3f6   :  { %v2898_v58 = vadd.f32 %v2897_v16, %v2857_v14  ;;  %v2904_v18 = vmax.f32 %v2896_v15, 0.0  ;;  %v4135_v15 = vld [vmem:[%s5196_s8 + $0x13] ss:$0 sm:$0xff] }
 0x3f7   :  { %v2899_v19 = vpop.f32.mrf.mxu1 }
 0x3f8   :  { %v2905_v17 = vmax.f32 %v2898_v58, 0.0  ;;  %v2908_v23 = vpack.c.bf16 %v2904_v18, %v2904_v18  ;;  %4159 = vmatpush3.bf16.msra.mxu1 %v4824_v43 }
 0x3f9   :  { %v2900_v20 = vpop.f32.mrf.mxu1 }
 0x3fa   :  { %v2909_v22 = vpack.c.bf16 %v2905_v17, %v2905_v17 }
 0x3fc   :  { %3368 = vmatprep.mubr.bf16.mxu0 %v2909_v22 }
 0x3fd   :  { %3369 = vmatmul.mubr.bf16.vlgmr.msra.gmra.mxu0 %v2908_v23 }
 0x3fe   :  { %4176 = vmatpush3.bf16.msra.mxu0 %v4825_v44  ;;  %4191 = vmatprep.mubr.msk.bf16.mxu0 %vm4929_vm3, %v4928_v45 }
 0x3ff   :  { %4177 = vmatprep.subr.bf16.mxu0 %v4928_v45 }
 0x402   :  { %4178 = vmatpush3.bf16.msra.mxu0 %v4826_v46 }
 0x403   :  { %4179 = vmatprep.subr.bf16.mxu0 %v4928_v45 }
 0x406   :  { %4180 = vmatpush3.bf16.msra.mxu0 %v4827_v48 }
 0x407   :  { %4181 = vmatprep.subr.bf16.mxu0 %v4928_v45 }
 0x40a   :  { %4182 = vmatpush3.bf16.msra.mxu0 %v4828_v49 }
 0x40b   :  { %4183 = vmatprep.subr.bf16.mxu0 %v4928_v45 }
 0x40e   :  { %4184 = vmatpush3.bf16.msra.mxu0 %v4829_v50 }
 0x40f   :  { %4185 = vmatprep.subr.bf16.mxu0 %v4928_v45 }
 0x412   :  { %4186 = vmatpush3.bf16.msra.mxu0 %v4830_v36 }
 0x413   :  { %4187 = vmatprep.subr.bf16.mxu0 %v4928_v45 }
 0x416   :  { %4188 = vmatpush3.bf16.msra.mxu0 %v4831_v39 }
 0x417   :  { %4189 = vmatprep.subr.bf16.mxu0 %v4928_v45 }
 0x49b   :  { %v3329_v51 = vpop.f32.mrf.mxu1 }
 0x49d   :  { %v3331_v53 = vpop.f32.mrf.mxu1 }
 0x49f   :  { %v3333_v54 = vpop.f32.mrf.mxu1 }
 0x4a1   :  { %v3334_v26 = vpop.f32.mrf.mxu1 }
 0x4bd   :  { %v3370_v56 = vpop.f32.mrf.mxu0 }
 0x4be   :  { %v3371_v57 = vadd.f32 %v3370_v56, %v3329_v51 }
 0x4bf   :  { %v3372_v60 = vpop.f32.mrf.mxu0 }
 0x4c0   :  { %v3377_v61 = vadd.f32 %v3371_v57, %v5082_v47  ;;  %v3373_v62 = vadd.f32 %v3372_v60, %v3331_v53  ;;  %v4832_v47 = vld [vmem:[%s5195_s7] sm:$0xff]   ;;  %s4930_s7 = smov [#allocation8]  }
 0x4c1   :  { %v3374_v63 = vpop.f32.mrf.mxu0  ;;  %4190 = vmatpush3.bf16.msra.mxu0 %v4832_v47  ;;  %s3693_s16 = sshll.u32 %s4930_s7, 4  ;;  %s3694_s16 = int_to_ptr.vmem [resolvable:$true] %s3693_s16 }
 0x4c2   :  { %v3391_v1 = vadd.f32 %v3384_v59, %v3377_v61  ;;  %v3378_v2 = vadd.f32 %v3373_v62, %v5084_v52  ;;  %s4893_s17 = scalar_lea.vmem %s3694_s16, 32  ;;  %p4898_p2 = scmp.lt.s32.totalorder %s3694_s16, %s3694_s16 }
 0x4c3   :  { %v3375_v3 = vpop.f32.mrf.mxu0  ;;  %p4894_p1 = scmp.ne.s32.totalorder %s3694_s16, %s4893_s17  ;;  %p4899_p3 = scmp.lt.s32.totalorder %s4893_s17, %s4893_s17 }
 0x4c4   :  { %v3392_v4 = vadd.f32 %v3388_v33, %v3378_v2  ;;  %v3393_v21 = vmax.f32 %v3391_v1, 0.0 }
 0x4c5   :  { %p4900_p4 = por %p4899_p3, %p4898_p2 }
 0x4c6   :  { %v3394_v0 = vmax.f32 %v3392_v4, 0.0  ;;  %v3395_v6 = vpack.c.bf16 %v3393_v21, %v3393_v21 }
 0x4c7   :  { %p4901_p5 = pnand %p4900_p4, %p4894_p1 }
 0x4c8   :  { %v3396_v5 = vpack.c.bf16 %v3394_v0, %v3394_v0 }
 0x4ca   :  { %3564 = vmatprep.mubr.bf16.mxu1 %v3396_v5 }
 0x4cb   :  { %3565 = vmatmul.mubr.bf16.vlgmr.msra.gmra.mxu1 %v3395_v6 }
 0x58b   :  { %v4160_v52 = vpop.f32.mrf.mxu1 }
 0x58d   :  { %v4161_v8 = vpop.f32.mrf.mxu1 }
 0x58e   :  { %v4162_v9 = vadd.f32 %v4161_v8, %v4160_v52 }
 0x58f   :  { %v4163_v10 = vpop.f32.mrf.mxu1 }
 0x590   :  { %v3567_v11 = vadd.f32 %v4162_v9, %v4118_v7 }
 0x591   :  { %v4164_v12 = vpop.f32.mrf.mxu1 }
 0x592   :  { %v3572_v13 = vmax.f32 %v3567_v11, 0.0 }
 0x594   :  { %v3573_v14 = vpack.c.bf16 %v3572_v13, %v3572_v13 }
 0x596   :  { %4192 = vmatmul.mubr.bf16.vlgmr.msra.gmra.mxu0 %v3573_v14 }
 0x656   :  { %v3679_v16 = vpop.f32.mrf.mxu0 }
 0x657   :  { %v3680_v58 = vadd.f32 %v4135_v15, %v3679_v16 }
 0x658   :  { %v4193_v18 = vpop.f32.mrf.mxu0 }
 0x659   :  { %3686 = vst.msk [vmem:[#allocation8] sm:$0x3] %vm3685_vm4, %v3680_v58 }
 0x65a   :  { %v3682_v19 = vpop.f32.mrf.mxu0 }
 0x65b   :  { %4904 = shalt.err (!%p4901_p5)
}
 0x65c   :  { %3696 = dma.vmem_to_hbm [thread:$0]  %s3694_s16, 32, %s5197_s9, [#allocation4]   ;;  %v4194_v17 = vpop.f32.mrf.mxu0 }
 0x65d   :  { %4917 = dma.done.wait [#allocation4], 32  }
 0x65e   :  { %4918 = vsyncadd [#allocation4], 4294967264 }
 0x65f   :  { %3700 = vsyncpa [#allocation3], 1 }
 0x660   :  { %3701 = vsyncpa [#allocation6], 1 }
 0x661   :  { %3702 = vsyncpa [#allocation4], 1 }

</bundles_post_ra>
